<compile_context>
chip_gen: v7x
topology: tpu7x:2x2x1
jax: 0.10.0
libtpu: 0.0.40
codegen_flags: <defaults>
</compile_context>

<pallas_src>
import functools

import jax
import jax.numpy as jnp
from jax.experimental import pallas as pl
from jax.experimental.pallas import tpu as pltpu

EPS = 1e-5


def _pick_tile(hw: int, target: int) -> int:
    """Largest tile <= target that divides hw and is a multiple of 128.

    Falls back to the full extent when hw is not a multiple of 128 (a block
    equal to the full array dim is always legal)."""
    if hw % 128 != 0:
        return hw
    t = min(target, hw)
    t = max(128, t - t % 128)
    while hw % t:
        t -= 128
    return t


def _vmem_cap_bytes() -> int:
    try:
        return int(pltpu.get_tpu_info().vmem_capacity_bytes)
    except Exception:  # interpret mode / unknown device
        return 64 * 2**20


# --------------------------- streaming MVN statistics -----------------------
def _moments(x, tile):
    """x: (N, C, HW) -> (mean, rstd), each (N, C, 1) float32.

    Unbiased variance (ddof=1) + EPS, matching torch.var()'s default.  The
    spatial axis is streamed in `tile`-wide chunks so VMEM stays O(C * tile).
    TODO(synk): sum/sumsq in f32 can lose precision for very large HW with a
    big mean; switch to a shifted update if inputs are not roughly centered."""
    N, C, HW = x.shape
    nt = HW // tile

    def kernel(x_ref, mean_ref, rstd_ref, s_ref, ss_ref):
        t = pl.program_id(1)

        @pl.when(t == 0)
        def _():
            s_ref[...] = jnp.zeros_like(s_ref)
            ss_ref[...] = jnp.zeros_like(ss_ref)

        xt = x_ref[...].astype(jnp.float32)                 # (C, tile)
        s_ref[...] += jnp.sum(xt, axis=1, keepdims=True)
        ss_ref[...] += jnp.sum(xt * xt, axis=1, keepdims=True)

        @pl.when(t == nt - 1)
        def _():
            n = jnp.float32(HW)
            mean = s_ref[...] / n
            var = (ss_ref[...] - n * mean * mean) / (n - 1.0) + EPS
            mean_ref[...] = mean
            rstd_ref[...] = jax.lax.rsqrt(var)

    return pl.pallas_call(
        kernel,
        out_shape=(jax.ShapeDtypeStruct((N, C, 1), jnp.float32),
                   jax.ShapeDtypeStruct((N, C, 1), jnp.float32)),
        grid=(N, nt),
        in_specs=[pl.BlockSpec((None, C, tile), lambda b, t: (b, 0, t))],
        out_specs=(pl.BlockSpec((None, C, 1), lambda b, t: (b, 0, 0)),
                   pl.BlockSpec((None, C, 1), lambda b, t: (b, 0, 0))),
        scratch_shapes=[pltpu.VMEM((C, 1), jnp.float32),
                        pltpu.VMEM((C, 1), jnp.float32)],
        compiler_params=pltpu.CompilerParams(
            dimension_semantics=("parallel", "arbitrary")),
    )(x)


# ------------------- hoisted per-batch style projections (G, H) -------------
def _project_style(style2, w_gh, b_gh, tile, compute_dtype):
    """style2: (N, C, HW); w_gh: (N, 2C, C) compute dtype (MVN already folded
    into the G rows); b_gh: (N, 2C, 1) f32.  Returns G, H as (N, C, HW) arrays
    in compute dtype -- one stacked matmul per style tile."""
    N, C, HW = style2.shape
    twoC = w_gh.shape[1]
    nt = HW // tile

    def kernel(s_ref, w_ref, b_ref, g_ref, h_ref):
        proj = (jnp.dot(w_ref[...], s_ref[...].astype(w_ref.dtype),
                        preferred_element_type=jnp.float32)
                + b_ref[...])                                 # (2C, tile) f32
        g_ref[...] = proj[:C].astype(g_ref.dtype)
        h_ref[...] = proj[C:].astype(h_ref.dtype)

    return pl.pallas_call(
        kernel,
        out_shape=(jax.ShapeDtypeStruct((N, C, HW), compute_dtype),
                   jax.ShapeDtypeStruct((N, C, HW), compute_dtype)),
        grid=(N, nt),
        in_specs=[pl.BlockSpec((None, C, tile), lambda b, t: (b, 0, t)),
                  pl.BlockSpec((None, twoC, C), lambda b, t: (b, 0, 0)),
                  pl.BlockSpec((None, twoC, 1), lambda b, t: (b, 0, 0))],
        out_specs=(pl.BlockSpec((None, C, tile), lambda b, t: (b, 0, t)),
                   pl.BlockSpec((None, C, tile), lambda b, t: (b, 0, t))),
        compiler_params=pltpu.CompilerParams(
            dimension_semantics=("parallel", "arbitrary")),
    )(style2, w_gh, b_gh)


# --------------------------- fused SANet attention kernel -------------------
def _sanet_attn_kernel(c_ref, g_ref, h_ref, wf_ref, bf_ref, wo_ref, bo_ref,
                       o_ref, f_scr, acc_scr, m_scr, l_scr):
    ks = pl.program_id(2)
    cdt = f_scr.dtype                       # MXU compute dtype

    # ---- once per (batch, q-tile): F = Wf'@content + bf' (MVN folded into
    # the weights); reset the online-softmax state ----
    @pl.when(ks == 0)
    def _():
        f = (jnp.dot(wf_ref[...], c_ref[...].astype(cdt),
                     preferred_element_type=jnp.float32)
             + bf_ref[...])                                   # (C, TQ) f32
        f_scr[...] = f.astype(cdt)
        m_scr[...] = jnp.full_like(m_scr, -jnp.inf)
        l_scr[...] = jnp.zeros_like(l_scr)
        acc_scr[...] = jnp.zeros_like(acc_scr)

    # ---- scores in (TK, TQ) layout: contract the channel axes directly (no
    # materialized .T); softmax axis = sublanes, running stats are (1, TQ)
    # lane vectors broadcasting over the (C, TQ) accumulator for free ----
    scores = jax.lax.dot_general(
        g_ref[...], f_scr[...],
        dimension_numbers=(((0,), (0,)), ((), ())),
        preferred_element_type=jnp.float32)                   # (TK, TQ)

    m_prev = m_scr[...]
    m_new = jnp.maximum(m_prev, jnp.max(scores, axis=0, keepdims=True))
    alpha = jnp.exp(m_prev - m_new)                           # (1, TQ)
    p = jnp.exp(scores - m_new)                               # (TK, TQ)
    l_scr[...] = alpha * l_scr[...] + jnp.sum(p, axis=0, keepdims=True)
    acc_scr[...] = alpha * acc_scr[...] + jnp.dot(
        h_ref[...], p.astype(cdt), preferred_element_type=jnp.float32)
    m_scr[...] = m_new

    # ---- finalize: normalize, out_conv, residual (reduction axis is the
    # innermost grid axis, so this runs exactly once per output block) ----
    @pl.when(ks == pl.num_programs(2) - 1)
    def _():
        o_n = acc_scr[...] / l_scr[...]                       # (C, TQ) f32
        out = (jnp.dot(wo_ref[...], o_n.astype(cdt),
                       preferred_element_type=jnp.float32)
               + bo_ref[...]
               + c_ref[...].astype(jnp.float32))
        o_ref[...] = out.astype(o_ref.dtype)


def sanet_forward(content, style, params, *, tile_q=512, tile_k=512,
                  compute_dtype=jnp.bfloat16):
    """content: (N, C, Hc, Wc), style: (N, C, Hs, Ws) -- NCHW, like PyTorch."""
    N, C, Hc, Wc = content.shape
    Ns, Cs, Hs, Ws = style.shape
    assert (N, C) == (Ns, Cs)
    HWc, HWs = Hc * Wc, Hs * Ws

    c2 = content.reshape(N, C, HWc)
    s2 = style.reshape(N, C, HWs)

    (wf, bf), (wg, bg), (wh, bh), (wo, bo) = params
    wf, wg, wh, wo = (w.astype(jnp.float32) for w in (wf, wg, wh, wo))
    bf, bg, bh, bo = (b.astype(jnp.float32) for b in (bf, bg, bh, bo))

    tq = _pick_tile(HWc, tile_q)     # content-position (lane) tile
    tk = _pick_tile(HWs, tile_k)     # style-position (reduction) tile
    nq, nk = HWc // tq, HWs // tk

    # per-(batch, channel) statistics for mean_variance_norm
    mc, rc = _moments(c2, tq)
    ms, rs = _moments(s2, tk)

    # Fold MVN into the f / g weights (per batch):
    #   W @ ((x - m) * r) + b  ==  (W * r[None, :]) @ x + (b - W @ (m * r))
    rc_, mc_ = rc[:, :, 0], mc[:, :, 0]
    rs_, ms_ = rs[:, :, 0], ms[:, :, 0]
    wf_fold = (wf[None] * rc_[:, None, :]).astype(compute_dtype)       # (N,C,C)
    bf_fold = (bf[None] - jnp.einsum('oc,nc->no', wf, mc_ * rc_))[:, :, None]
    wg_fold = wg[None] * rs_[:, None, :]                                # (N,C,C)
    bg_fold = (bg[None] - jnp.einsum('oc,nc->no', wg, ms_ * rs_))[:, :, None]

    # Stack [g'; h] so the per-style-tile projection is one (2C,C) matmul.
    w_gh = jnp.concatenate(
        [wg_fold, jnp.broadcast_to(wh[None], (N, C, C))], axis=1
    ).astype(compute_dtype)                                             # (N,2C,C)
    b_gh = jnp.concatenate(
        [bg_fold, jnp.broadcast_to(bh[None, :, None], (N, C, 1))], axis=1)

    # Hoisted style projections: computed once per batch, stored in HBM in the
    # compute dtype, and read by the attention kernel as plain K/V tiles.
    g_proj, h_proj = _project_style(s2, w_gh, b_gh, tk, compute_dtype)

    wo_c = wo.astype(compute_dtype)
    bo2 = bo.reshape(C, 1)

    # ---- VMEM budget: clamp to device capacity with headroom (v7x = 64 MiB).
    cdt_size = jnp.dtype(compute_dtype).itemsize
    in_size = jnp.dtype(content.dtype).itemsize
    est = (2 * (C * tq * in_size                      # content tile (x2 buf)
                + 2 * C * tk * cdt_size               # G + H tiles
                + 2 * (C * C * cdt_size + C * 4)      # wf_fold/bf, wo/bo
                + C * tq * in_size)                   # output tile
           + C * tq * cdt_size                        # f_scr
           + C * tq * 4 + 2 * tq * 4                  # acc, m, l
           + 3 * tk * tq * 4 + 2 * C * tq * 4)        # scores/p/misc f32 temps
    cap = _vmem_cap_bytes()
    vmem_limit = int(min(int(cap * 0.85), max(32 * 2**20, 2 * est)))

    out = pl.pallas_call(
        _sanet_attn_kernel,
        out_shape=jax.ShapeDtypeStruct((N, C, HWc), content.dtype),
        grid=(N, nq, nk),
        in_specs=[
            pl.BlockSpec((None, C, tq), lambda b, q, k: (b, 0, q)),   # content
            pl.BlockSpec((None, C, tk), lambda b, q, k: (b, 0, k)),   # G
            pl.BlockSpec((None, C, tk), lambda b, q, k: (b, 0, k)),   # H
            pl.BlockSpec((None, C, C), lambda b, q, k: (b, 0, 0)),    # Wf'
            pl.BlockSpec((None, C, 1), lambda b, q, k: (b, 0, 0)),    # bf'
            pl.BlockSpec((C, C), lambda b, q, k: (0, 0)),             # Wo
            pl.BlockSpec((C, 1), lambda b, q, k: (0, 0)),             # bo
        ],
        out_specs=pl.BlockSpec((None, C, tq), lambda b, q, k: (b, 0, q)),
        scratch_shapes=[
            pltpu.VMEM((C, tq), compute_dtype),   # cached F tile (MXU operand)
            pltpu.VMEM((C, tq), jnp.float32),     # running output accumulator
            pltpu.VMEM((1, tq), jnp.float32),     # running max
            pltpu.VMEM((1, tq), jnp.float32),     # running softmax denominator
        ],
        compiler_params=pltpu.CompilerParams(
            dimension_semantics=("parallel", "parallel", "arbitrary"),
            vmem_limit_bytes=vmem_limit),
    )(c2, g_proj, h_proj, wf_fold, bf_fold, wo_c, bo2)

    return out.reshape(N, C, Hc, Wc)


# ---------------- pure-JAX reference (for correctness check) ----------------
def _ref_mvn(x):
    N, C, H, W = x.shape
    xf = x.reshape(N, C, -1)
    mean = xf.mean(-1)[:, :, None, None]
    var = xf.var(-1, ddof=1)[:, :, None, None] + EPS
    return (x - mean) / jnp.sqrt(var)


def _ref_conv1x1(x, w, b):
    return jnp.einsum('oi,nihw->nohw', w, x) + b[None, :, None, None]


def sanet_reference(content, style, params):
    (wf, bf), (wg, bg), (wh, bh), (wo, bo) = params
    F = _ref_conv1x1(_ref_mvn(content), wf, bf)
    G = _ref_conv1x1(_ref_mvn(style), wg, bg)
    Hm = _ref_conv1x1(style, wh, bh)
    b, c, h, w = F.shape
    Ff = F.reshape(b, c, h * w).transpose(0, 2, 1)     # (b, HWc, C)
    Gf = G.reshape(b, c, -1)                           # (b, C, HWs)
    S = jax.nn.softmax(jnp.einsum('bqc,bck->bqk', Ff, Gf), axis=-1)
    Hf = Hm.reshape(b, c, -1)                          # (b, C, HWs)
    O = jnp.einsum('bck,bqk->bcq', Hf, S)              # (b, C, HWc)
    bc, cc, hc, wc = content.shape
    O = O.reshape(bc, cc, hc, wc)
    O = _ref_conv1x1(O, wo, bo)
    return O + content


if __name__ == "__main__":
    def conv_params(kw, kb, C):
        w = jax.random.normal(kw, (C, C), jnp.float32) * 0.1
        b = jax.random.normal(kb, (C,), jnp.float32) * 0.1
        return w, b

    def run_case(key, N, C, H, W, tile_q, tile_k, compute_dtype, tol):
        keys = jax.random.split(key, 10)
        content = jax.random.normal(keys[0], (N, C, H, W), jnp.float32)
        style = jax.random.normal(keys[1], (N, C, H, W), jnp.float32)
        params = (conv_params(keys[2], keys[3], C),
                  conv_params(keys[4], keys[5], C),
                  conv_params(keys[6], keys[7], C),
                  conv_params(keys[8], keys[9], C))
        fwd = jax.jit(functools.partial(
            sanet_forward, tile_q=tile_q, tile_k=tile_k,
            compute_dtype=compute_dtype))
        out = jax.block_until_ready(fwd(content, style, params))
        ref = sanet_reference(content, style, params)
        assert out.shape == content.shape
        err = float(jnp.max(jnp.abs(out.astype(jnp.float32) - ref)))
        scale = float(jnp.max(jnp.abs(ref)))
        # scale-aware tolerance: covers default-precision f32 MXU passes in the
        # f32 case and bf16 operand rounding in the bf16 case.
        assert err <= tol * (1.0 + scale), (
            f"mismatch: max|err|={err}, scale={scale}, tol={tol}")

    key = jax.random.PRNGKey(0)
    k1, k2, k3 = jax.random.split(key, 3)
    # f32 MXU path, tiled grid (2, 2, 2): exercises the online softmax across
    # style tiles and q-tile parallelism.
    run_case(k1, N=2, C=32, H=16, W=16, tile_q=128, tile_k=128,
             compute_dtype=jnp.float32, tol=1e-2)
    # default bf16 MXU path (looser, scale-relative tolerance).
    run_case(k2, N=2, C=32, H=16, W=16, tile_q=128, tile_k=128,
             compute_dtype=jnp.bfloat16, tol=6e-2)
    # full-extent fallback path (spatial size not a multiple of 128).
    run_case(k3, N=2, C=8, H=8, W=8, tile_q=512, tile_k=512,
             compute_dtype=jnp.bfloat16, tol=6e-2)
    print("KERNEL_OK")
</pallas_src>

<mosaic_0001>
module attributes {stable_mosaic.version = 11 : i64} {
  func.func @kernel(%arg0: i32, %arg1: i32, %arg2: memref<1x32x128xf32, #tpu.memory_space<vmem>>, %arg3: memref<1x32x1xf32, #tpu.memory_space<vmem>>, %arg4: memref<1x32x1xf32, #tpu.memory_space<vmem>>, %arg5: memref<32x1xf32, #tpu.memory_space<vmem>>, %arg6: memref<32x1xf32, #tpu.memory_space<vmem>>) attributes {dimension_semantics = [#tpu.dimension_semantics<parallel>, #tpu.dimension_semantics<arbitrary>], iteration_bounds = array<i64: 2, 2>, scalar_prefetch = 0 : i64, scratch_operands = 2 : i64, tpu.core_type = #tpu.core_type<tc>, window_params = [{transform_indices = @transform_0, window_bounds = array<i64: 1, 32, 128>}, {transform_indices = @transform_1, window_bounds = array<i64: 1, 32, 1>}, {transform_indices = @transform_2, window_bounds = array<i64: 1, 32, 1>}]} {
    %c0_i32 = arith.constant 0 : i32
    %0 = arith.cmpi eq, %arg1, %c0_i32 : i32
    %1 = arith.extui %0 : i1 to i32
    %c0_i32_0 = arith.constant 0 : i32
    %2 = arith.cmpi ne, %1, %c0_i32_0 : i32
    scf.if %2 {
      %cst_13 = arith.constant 0.000000e+00 : f32
      %19 = vector.broadcast %cst_13 : f32 to vector<32x1xf32>
      %c0_14 = arith.constant 0 : index
      %c0_15 = arith.constant 0 : index
      %20 = vector.load %arg5[%c0_14, %c0_15] : memref<32x1xf32, #tpu.memory_space<vmem>>, vector<32x1xf32>
      tpu.vector_store %arg5[%c0_14, %c0_15], %19 {strides = array<i32>} : memref<32x1xf32, #tpu.memory_space<vmem>>, vector<32x1xf32>,
      %cst_16 = arith.constant 0.000000e+00 : f32
      %21 = vector.broadcast %cst_16 : f32 to vector<32x1xf32>
      %c0_17 = arith.constant 0 : index
      %c0_18 = arith.constant 0 : index
      %22 = vector.load %arg6[%c0_17, %c0_18] : memref<32x1xf32, #tpu.memory_space<vmem>>, vector<32x1xf32>
      tpu.vector_store %arg6[%c0_17, %c0_18], %21 {strides = array<i32>} : memref<32x1xf32, #tpu.memory_space<vmem>>, vector<32x1xf32>,
    } else {
    }
    %c0 = arith.constant 0 : index
    %c0_1 = arith.constant 0 : index
    %c0_2 = arith.constant 0 : index
    %3 = vector.load %arg2[%c0, %c0_1, %c0_2] : memref<1x32x128xf32, #tpu.memory_space<vmem>>, vector<1x32x128xf32>
    %4 = vector.shape_cast %3 : vector<1x32x128xf32> to vector<32x128xf32>
    %c0_3 = arith.constant 0 : index
    %c0_4 = arith.constant 0 : index
    %5 = vector.load %arg5[%c0_3, %c0_4] : memref<32x1xf32, #tpu.memory_space<vmem>>, vector<32x1xf32>
    %cst = arith.constant dense<0.000000e+00> : vector<32xf32>
    %6 = vector.multi_reduction <add>, %4, %cst [1] : vector<32x128xf32> to vector<32xf32>
    %7 = vector.shape_cast %6 : vector<32xf32> to vector<32x1xf32>
    %8 = arith.addf %5, %7 : vector<32x1xf32>
    %c0_5 = arith.constant 0 : index
    %c0_6 = arith.constant 0 : index
    %9 = vector.load %arg5[%c0_5, %c0_6] : memref<32x1xf32, #tpu.memory_space<vmem>>, vector<32x1xf32>
    tpu.vector_store %arg5[%c0_5, %c0_6], %8 {strides = array<i32>} : memref<32x1xf32, #tpu.memory_space<vmem>>, vector<32x1xf32>,
    %c0_7 = arith.constant 0 : index
    %c0_8 = arith.constant 0 : index
    %10 = vector.load %arg6[%c0_7, %c0_8] : memref<32x1xf32, #tpu.memory_space<vmem>>, vector<32x1xf32>
    %11 = arith.mulf %4, %4 : vector<32x128xf32>
    %cst_9 = arith.constant dense<0.000000e+00> : vector<32xf32>
    %12 = vector.multi_reduction <add>, %11, %cst_9 [1] : vector<32x128xf32> to vector<32xf32>
    %13 = vector.shape_cast %12 : vector<32xf32> to vector<32x1xf32>
    %14 = arith.addf %10, %13 : vector<32x1xf32>
    %c0_10 = arith.constant 0 : index
    %c0_11 = arith.constant 0 : index
    %15 = vector.load %arg6[%c0_10, %c0_11] : memref<32x1xf32, #tpu.memory_space<vmem>>, vector<32x1xf32>
    tpu.vector_store %arg6[%c0_10, %c0_11], %14 {strides = array<i32>} : memref<32x1xf32, #tpu.memory_space<vmem>>, vector<32x1xf32>,
    %c1_i32 = arith.constant 1 : i32
    %16 = arith.cmpi eq, %arg1, %c1_i32 : i32
    %17 = arith.extui %16 : i1 to i32
    %c0_i32_12 = arith.constant 0 : i32
    %18 = arith.cmpi ne, %17, %c0_i32_12 : i32
    scf.if %18 {
      %c0_13 = arith.constant 0 : index
      %c0_14 = arith.constant 0 : index
      %19 = vector.load %arg5[%c0_13, %c0_14] : memref<32x1xf32, #tpu.memory_space<vmem>>, vector<32x1xf32>
      %cst_15 = arith.constant 2.560000e+02 : f32
      %20 = vector.broadcast %cst_15 : f32 to vector<32x1xf32>
      %21 = arith.divf %19, %20 : vector<32x1xf32>
      %c0_16 = arith.constant 0 : index
      %c0_17 = arith.constant 0 : index
      %22 = vector.load %arg6[%c0_16, %c0_17] : memref<32x1xf32, #tpu.memory_space<vmem>>, vector<32x1xf32>
      %cst_18 = arith.constant 2.560000e+02 : f32
      %23 = vector.broadcast %cst_18 : f32 to vector<32x1xf32>
      %24 = arith.mulf %23, %21 : vector<32x1xf32>
      %25 = arith.mulf %24, %21 : vector<32x1xf32>
      %26 = arith.subf %22, %25 : vector<32x1xf32>
      %cst_19 = arith.constant 2.560000e+02 : f32
      %cst_20 = arith.constant 1.000000e+00 : f32
      %27 = arith.subf %cst_19, %cst_20 : f32
      %28 = vector.broadcast %27 : f32 to vector<32x1xf32>
      %29 = arith.divf %26, %28 : vector<32x1xf32>
      %cst_21 = arith.constant 9.99999974E-6 : f32
      %30 = vector.broadcast %cst_21 : f32 to vector<32x1xf32>
      %31 = arith.addf %29, %30 : vector<32x1xf32>
      %c0_22 = arith.constant 0 : index
      %c0_23 = arith.constant 0 : index
      %c0_24 = arith.constant 0 : index
      %32 = vector.load %arg3[%c0_22, %c0_23, %c0_24] : memref<1x32x1xf32, #tpu.memory_space<vmem>>, vector<1x32x1xf32>
      %33 = vector.shape_cast %32 : vector<1x32x1xf32> to vector<32x1xf32>
      %34 = vector.shape_cast %21 : vector<32x1xf32> to vector<1x32x1xf32>
      tpu.vector_store %arg3[%c0_22, %c0_23, %c0_24], %34 {strides = array<i32>} : memref<1x32x1xf32, #tpu.memory_space<vmem>>, vector<1x32x1xf32>,
      %35 = math.rsqrt %31 : vector<32x1xf32>
      %c0_25 = arith.constant 0 : index
      %c0_26 = arith.constant 0 : index
      %c0_27 = arith.constant 0 : index
      %36 = vector.load %arg4[%c0_25, %c0_26, %c0_27] : memref<1x32x1xf32, #tpu.memory_space<vmem>>, vector<1x32x1xf32>
      %37 = vector.shape_cast %36 : vector<1x32x1xf32> to vector<32x1xf32>
      %38 = vector.shape_cast %35 : vector<32x1xf32> to vector<1x32x1xf32>
      tpu.vector_store %arg4[%c0_25, %c0_26, %c0_27], %38 {strides = array<i32>} : memref<1x32x1xf32, #tpu.memory_space<vmem>>, vector<1x32x1xf32>,
    } else {
    }
    return
  }
  func.func @transform_0(%arg0: i32, %arg1: i32) -> (i32, i32, i32) {
    %c0_i32 = arith.constant 0 : i32
    %c0_i32_0 = arith.constant 0 : i32
    return %arg0, %c0_i32, %arg1 : i32, i32, i32
  }
  func.func @transform_1(%arg0: i32, %arg1: i32) -> (i32, i32, i32) {
    %c0_i32 = arith.constant 0 : i32
    %c0_i32_0 = arith.constant 0 : i32
    %c0_i32_1 = arith.constant 0 : i32
    return %arg0, %c0_i32, %c0_i32_0 : i32, i32, i32
  }
  func.func @transform_2(%arg0: i32, %arg1: i32) -> (i32, i32, i32) {
    %c0_i32 = arith.constant 0 : i32
    %c0_i32_0 = arith.constant 0 : i32
    %c0_i32_1 = arith.constant 0 : i32
    return %arg0, %c0_i32, %c0_i32_0 : i32, i32, i32
  }
}

module attributes {stable_mosaic.version = 11 : i64} {
  func.func @kernel(%arg0: i32, %arg1: i32, %arg2: memref<1x32x128xf32, #tpu.memory_space<vmem>>, %arg3: memref<1x64x32xf32, #tpu.memory_space<vmem>>, %arg4: memref<1x64x1xf32, #tpu.memory_space<vmem>>, %arg5: memref<1x32x128xf32, #tpu.memory_space<vmem>>, %arg6: memref<1x32x128xf32, #tpu.memory_space<vmem>>) attributes {dimension_semantics = [#tpu.dimension_semantics<parallel>, #tpu.dimension_semantics<arbitrary>], iteration_bounds = array<i64: 2, 2>, scalar_prefetch = 0 : i64, scratch_operands = 0 : i64, tpu.core_type = #tpu.core_type<tc>, window_params = [{transform_indices = @transform_0, window_bounds = array<i64: 1, 32, 128>}, {transform_indices = @transform_1, window_bounds = array<i64: 1, 64, 32>}, {transform_indices = @transform_2, window_bounds = array<i64: 1, 64, 1>}, {transform_indices = @transform_3, window_bounds = array<i64: 1, 32, 128>}, {transform_indices = @transform_4, window_bounds = array<i64: 1, 32, 128>}]} {
    %c0 = arith.constant 0 : index
    %c0_0 = arith.constant 0 : index
    %c0_1 = arith.constant 0 : index
    %0 = vector.load %arg3[%c0, %c0_0, %c0_1] : memref<1x64x32xf32, #tpu.memory_space<vmem>>, vector<1x64x32xf32>
    %1 = vector.shape_cast %0 : vector<1x64x32xf32> to vector<64x32xf32>
    %c0_2 = arith.constant 0 : index
    %c0_3 = arith.constant 0 : index
    %c0_4 = arith.constant 0 : index
    %2 = vector.load %arg2[%c0_2, %c0_3, %c0_4] : memref<1x32x128xf32, #tpu.memory_space<vmem>>, vector<1x32x128xf32>
    %3 = vector.shape_cast %2 : vector<1x32x128xf32> to vector<32x128xf32>
    %cst = arith.constant dense<0.000000e+00> : vector<64x128xf32>
    %4 = tpu.matmul %1, %3, %cst {dimension_numbers = #tpu.dot_dimension_numbers<[1], [0], [0], [1], [0, 0, 1, 1], [], []>} : vector<64x32xf32>, vector<32x128xf32>, vector<64x128xf32> -> vector<64x128xf32>
    %c0_5 = arith.constant 0 : index
    %c0_6 = arith.constant 0 : index
    %c0_7 = arith.constant 0 : index
    %5 = vector.load %arg4[%c0_5, %c0_6, %c0_7] : memref<1x64x1xf32, #tpu.memory_space<vmem>>, vector<1x64x1xf32>
    %6 = vector.shape_cast %5 : vector<1x64x1xf32> to vector<64x1xf32>
    %7 = vector.broadcast %6 : vector<64x1xf32> to vector<64x128xf32>
    %8 = arith.addf %4, %7 : vector<64x128xf32>
    %9 = vector.extract_strided_slice %8 {offsets = [0, 0], sizes = [32, 128], strides = [1, 1]} : vector<64x128xf32> to vector<32x128xf32>
    %c0_8 = arith.constant 0 : index
    %c0_9 = arith.constant 0 : index
    %c0_10 = arith.constant 0 : index
    %10 = vector.load %arg5[%c0_8, %c0_9, %c0_10] : memref<1x32x128xf32, #tpu.memory_space<vmem>>, vector<1x32x128xf32>
    %11 = vector.shape_cast %10 : vector<1x32x128xf32> to vector<32x128xf32>
    %12 = vector.shape_cast %9 : vector<32x128xf32> to vector<1x32x128xf32>
    tpu.vector_store %arg5[%c0_8, %c0_9, %c0_10], %12 {strides = array<i32>} : memref<1x32x128xf32, #tpu.memory_space<vmem>>, vector<1x32x128xf32>,
    %13 = vector.extract_strided_slice %8 {offsets = [32, 0], sizes = [32, 128], strides = [1, 1]} : vector<64x128xf32> to vector<32x128xf32>
    %c0_11 = arith.constant 0 : index
    %c0_12 = arith.constant 0 : index
    %c0_13 = arith.constant 0 : index
    %14 = vector.load %arg6[%c0_11, %c0_12, %c0_13] : memref<1x32x128xf32, #tpu.memory_space<vmem>>, vector<1x32x128xf32>
    %15 = vector.shape_cast %14 : vector<1x32x128xf32> to vector<32x128xf32>
    %16 = vector.shape_cast %13 : vector<32x128xf32> to vector<1x32x128xf32>
    tpu.vector_store %arg6[%c0_11, %c0_12, %c0_13], %16 {strides = array<i32>} : memref<1x32x128xf32, #tpu.memory_space<vmem>>, vector<1x32x128xf32>,
    return
  }
  func.func @transform_0(%arg0: i32, %arg1: i32) -> (i32, i32, i32) {
    %c0_i32 = arith.constant 0 : i32
    %c0_i32_0 = arith.constant 0 : i32
    return %arg0, %c0_i32, %arg1 : i32, i32, i32
  }
  func.func @transform_1(%arg0: i32, %arg1: i32) -> (i32, i32, i32) {
    %c0_i32 = arith.constant 0 : i32
    %c0_i32_0 = arith.constant 0 : i32
    %c0_i32_1 = arith.constant 0 : i32
    return %arg0, %c0_i32, %c0_i32_0 : i32, i32, i32
  }
  func.func @transform_2(%arg0: i32, %arg1: i32) -> (i32, i32, i32) {
    %c0_i32 = arith.constant 0 : i32
    %c0_i32_0 = arith.constant 0 : i32
    %c0_i32_1 = arith.constant 0 : i32
    return %arg0, %c0_i32, %c0_i32_0 : i32, i32, i32
  }
  func.func @transform_3(%arg0: i32, %arg1: i32) -> (i32, i32, i32) {
    %c0_i32 = arith.constant 0 : i32
    %c0_i32_0 = arith.constant 0 : i32
    return %arg0, %c0_i32, %arg1 : i32, i32, i32
  }
  func.func @transform_4(%arg0: i32, %arg1: i32) -> (i32, i32, i32) {
    %c0_i32 = arith.constant 0 : i32
    %c0_i32_0 = arith.constant 0 : i32
    return %arg0, %c0_i32, %arg1 : i32, i32, i32
  }
}

module attributes {stable_mosaic.version = 11 : i64} {
  func.func @_sanet_attn_kernel(%arg0: i32, %arg1: i32, %arg2: i32, %arg3: memref<1x32x128xf32, #tpu.memory_space<vmem>>, %arg4: memref<1x32x128xf32, #tpu.memory_space<vmem>>, %arg5: memref<1x32x128xf32, #tpu.memory_space<vmem>>, %arg6: memref<1x32x32xf32, #tpu.memory_space<vmem>>, %arg7: memref<1x32x1xf32, #tpu.memory_space<vmem>>, %arg8: memref<32x32xf32, #tpu.memory_space<vmem>>, %arg9: memref<32x1xf32, #tpu.memory_space<vmem>>, %arg10: memref<1x32x128xf32, #tpu.memory_space<vmem>>, %arg11: memref<32x128xf32, #tpu.memory_space<vmem>>, %arg12: memref<32x128xf32, #tpu.memory_space<vmem>>, %arg13: memref<1x128xf32, #tpu.memory_space<vmem>>, %arg14: memref<1x128xf32, #tpu.memory_space<vmem>>) attributes {dimension_semantics = [#tpu.dimension_semantics<parallel>, #tpu.dimension_semantics<parallel>, #tpu.dimension_semantics<arbitrary>], iteration_bounds = array<i64: 2, 2, 2>, scalar_prefetch = 0 : i64, scratch_operands = 4 : i64, tpu.core_type = #tpu.core_type<tc>, window_params = [{transform_indices = @transform_0, window_bounds = array<i64: 1, 32, 128>}, {transform_indices = @transform_1, window_bounds = array<i64: 1, 32, 128>}, {transform_indices = @transform_2, window_bounds = array<i64: 1, 32, 128>}, {transform_indices = @transform_3, window_bounds = array<i64: 1, 32, 32>}, {transform_indices = @transform_4, window_bounds = array<i64: 1, 32, 1>}, {pipeline_mode = #tpu.pipeline_mode<synchronous>, transform_indices = @transform_5, window_bounds = array<i64: 32, 32>}, {pipeline_mode = #tpu.pipeline_mode<synchronous>, transform_indices = @transform_6, window_bounds = array<i64: 32, 1>}, {transform_indices = @transform_7, window_bounds = array<i64: 1, 32, 128>}]} {
    %c0_i32 = arith.constant 0 : i32
    %0 = arith.cmpi eq, %arg2, %c0_i32 : i32
    %1 = arith.extui %0 : i1 to i32
    %c0_i32_0 = arith.constant 0 : i32
    %2 = arith.cmpi ne, %1, %c0_i32_0 : i32
    scf.if %2 {
      %c0_24 = arith.constant 0 : index
      %c0_25 = arith.constant 0 : index
      %c0_26 = arith.constant 0 : index
      %34 = vector.load %arg6[%c0_24, %c0_25, %c0_26] : memref<1x32x32xf32, #tpu.memory_space<vmem>>, vector<1x32x32xf32>
      %35 = vector.shape_cast %34 : vector<1x32x32xf32> to vector<32x32xf32>
      %c0_27 = arith.constant 0 : index
      %c0_28 = arith.constant 0 : index
      %c0_29 = arith.constant 0 : index
      %36 = vector.load %arg3[%c0_27, %c0_28, %c0_29] : memref<1x32x128xf32, #tpu.memory_space<vmem>>, vector<1x32x128xf32>
      %37 = vector.shape_cast %36 : vector<1x32x128xf32> to vector<32x128xf32>
      %cst_30 = arith.constant dense<0.000000e+00> : vector<32x128xf32>
      %38 = tpu.matmul %35, %37, %cst_30 {dimension_numbers = #tpu.dot_dimension_numbers<[1], [0], [0], [1], [0, 0, 1, 1], [], []>} : vector<32x32xf32>, vector<32x128xf32>, vector<32x128xf32> -> vector<32x128xf32>
      %c0_31 = arith.constant 0 : index
      %c0_32 = arith.constant 0 : index
      %c0_33 = arith.constant 0 : index
      %39 = vector.load %arg7[%c0_31, %c0_32, %c0_33] : memref<1x32x1xf32, #tpu.memory_space<vmem>>, vector<1x32x1xf32>
      %40 = vector.shape_cast %39 : vector<1x32x1xf32> to vector<32x1xf32>
      %41 = vector.broadcast %40 : vector<32x1xf32> to vector<32x128xf32>
      %42 = arith.addf %38, %41 : vector<32x128xf32>
      %c0_34 = arith.constant 0 : index
      %c0_35 = arith.constant 0 : index
      %43 = vector.load %arg11[%c0_34, %c0_35] : memref<32x128xf32, #tpu.memory_space<vmem>>, vector<32x128xf32>
      tpu.vector_store %arg11[%c0_34, %c0_35], %42 {strides = array<i32>} : memref<32x128xf32, #tpu.memory_space<vmem>>, vector<32x128xf32>,
      %cst_36 = arith.constant 0xFF800000 : f32
      %44 = vector.broadcast %cst_36 : f32 to vector<1x128xf32>
      %c0_37 = arith.constant 0 : index
      %c0_38 = arith.constant 0 : index
      %45 = vector.load %arg13[%c0_37, %c0_38] : memref<1x128xf32, #tpu.memory_space<vmem>>, vector<1x128xf32>
      tpu.vector_store %arg13[%c0_37, %c0_38], %44 {strides = array<i32>} : memref<1x128xf32, #tpu.memory_space<vmem>>, vector<1x128xf32>,
      %cst_39 = arith.constant 0.000000e+00 : f32
      %46 = vector.broadcast %cst_39 : f32 to vector<1x128xf32>
      %c0_40 = arith.constant 0 : index
      %c0_41 = arith.constant 0 : index
      %47 = vector.load %arg14[%c0_40, %c0_41] : memref<1x128xf32, #tpu.memory_space<vmem>>, vector<1x128xf32>
      tpu.vector_store %arg14[%c0_40, %c0_41], %46 {strides = array<i32>} : memref<1x128xf32, #tpu.memory_space<vmem>>, vector<1x128xf32>,
      %cst_42 = arith.constant 0.000000e+00 : f32
      %48 = vector.broadcast %cst_42 : f32 to vector<32x128xf32>
      %c0_43 = arith.constant 0 : index
      %c0_44 = arith.constant 0 : index
      %49 = vector.load %arg12[%c0_43, %c0_44] : memref<32x128xf32, #tpu.memory_space<vmem>>, vector<32x128xf32>
      tpu.vector_store %arg12[%c0_43, %c0_44], %48 {strides = array<i32>} : memref<32x128xf32, #tpu.memory_space<vmem>>, vector<32x128xf32>,
    } else {
    }
    %c0 = arith.constant 0 : index
    %c0_1 = arith.constant 0 : index
    %c0_2 = arith.constant 0 : index
    %3 = vector.load %arg4[%c0, %c0_1, %c0_2] : memref<1x32x128xf32, #tpu.memory_space<vmem>>, vector<1x32x128xf32>
    %4 = vector.shape_cast %3 : vector<1x32x128xf32> to vector<32x128xf32>
    %c0_3 = arith.constant 0 : index
    %c0_4 = arith.constant 0 : index
    %5 = vector.load %arg11[%c0_3, %c0_4] : memref<32x128xf32, #tpu.memory_space<vmem>>, vector<32x128xf32>
    %cst = arith.constant dense<0.000000e+00> : vector<128x128xf32>
    %6 = tpu.matmul %4, %5, %cst {dimension_numbers = #tpu.dot_dimension_numbers<[0], [0], [1], [1], [0, 1, 1, 1], [], []>} : vector<32x128xf32>, vector<32x128xf32>, vector<128x128xf32> -> vector<128x128xf32>
    %c0_5 = arith.constant 0 : index
    %c0_6 = arith.constant 0 : index
    %7 = vector.load %arg13[%c0_5, %c0_6] : memref<1x128xf32, #tpu.memory_space<vmem>>, vector<1x128xf32>
    %cst_7 = arith.constant dense<0xFF800000> : vector<128xf32>
    %8 = vector.multi_reduction <maximumf>, %6, %cst_7 [0] : vector<128x128xf32> to vector<128xf32>
    %9 = vector.shape_cast %8 : vector<128xf32> to vector<1x128xf32>
    %10 = arith.maximumf %7, %9 : vector<1x128xf32>
    %11 = arith.subf %7, %10 : vector<1x128xf32>
    %12 = math.exp %11 : vector<1x128xf32>
    %13 = vector.broadcast %10 : vector<1x128xf32> to vector<128x128xf32>
    %14 = arith.subf %6, %13 : vector<128x128xf32>
    %15 = math.exp %14 : vector<128x128xf32>
    %c0_8 = arith.constant 0 : index
    %c0_9 = arith.constant 0 : index
    %16 = vector.load %arg14[%c0_8, %c0_9] : memref<1x128xf32, #tpu.memory_space<vmem>>, vector<1x128xf32>
    %17 = arith.mulf %12, %16 : vector<1x128xf32>
    %cst_10 = arith.constant dense<0.000000e+00> : vector<128xf32>
    %18 = vector.multi_reduction <add>, %15, %cst_10 [0] : vector<128x128xf32> to vector<128xf32>
    %19 = vector.shape_cast %18 : vector<128xf32> to vector<1x128xf32>
    %20 = arith.addf %17, %19 : vector<1x128xf32>
    %c0_11 = arith.constant 0 : index
    %c0_12 = arith.constant 0 : index
    %21 = vector.load %arg14[%c0_11, %c0_12] : memref<1x128xf32, #tpu.memory_space<vmem>>, vector<1x128xf32>
    tpu.vector_store %arg14[%c0_11, %c0_12], %20 {strides = array<i32>} : memref<1x128xf32, #tpu.memory_space<vmem>>, vector<1x128xf32>,
    %c0_13 = arith.constant 0 : index
    %c0_14 = arith.constant 0 : index
    %22 = vector.load %arg12[%c0_13, %c0_14] : memref<32x128xf32, #tpu.memory_space<vmem>>, vector<32x128xf32>
    %23 = vector.broadcast %12 : vector<1x128xf32> to vector<32x128xf32>
    %24 = arith.mulf %23, %22 : vector<32x128xf32>
    %c0_15 = arith.constant 0 : index
    %c0_16 = arith.constant 0 : index
    %c0_17 = arith.constant 0 : index
    %25 = vector.load %arg5[%c0_15, %c0_16, %c0_17] : memref<1x32x128xf32, #tpu.memory_space<vmem>>, vector<1x32x128xf32>
    %26 = vector.shape_cast %25 : vector<1x32x128xf32> to vector<32x128xf32>
    %cst_18 = arith.constant dense<0.000000e+00> : vector<32x128xf32>
    %27 = tpu.matmul %26, %15, %cst_18 {dimension_numbers = #tpu.dot_dimension_numbers<[1], [0], [0], [1], [0, 0, 1, 1], [], []>} : vector<32x128xf32>, vector<128x128xf32>, vector<32x128xf32> -> vector<32x128xf32>
    %28 = arith.addf %24, %27 : vector<32x128xf32>
    %c0_19 = arith.constant 0 : index
    %c0_20 = arith.constant 0 : index
    %29 = vector.load %arg12[%c0_19, %c0_20] : memref<32x128xf32, #tpu.memory_space<vmem>>, vector<32x128xf32>
    tpu.vector_store %arg12[%c0_19, %c0_20], %28 {strides = array<i32>} : memref<32x128xf32, #tpu.memory_space<vmem>>, vector<32x128xf32>,
    %c0_21 = arith.constant 0 : index
    %c0_22 = arith.constant 0 : index
    %30 = vector.load %arg13[%c0_21, %c0_22] : memref<1x128xf32, #tpu.memory_space<vmem>>, vector<1x128xf32>
    tpu.vector_store %arg13[%c0_21, %c0_22], %10 {strides = array<i32>} : memref<1x128xf32, #tpu.memory_space<vmem>>, vector<1x128xf32>,
    %c1_i32 = arith.constant 1 : i32
    %31 = arith.cmpi eq, %arg2, %c1_i32 : i32
    %32 = arith.extui %31 : i1 to i32
    %c0_i32_23 = arith.constant 0 : i32
    %33 = arith.cmpi ne, %32, %c0_i32_23 : i32
    scf.if %33 {
      %c0_24 = arith.constant 0 : index
      %c0_25 = arith.constant 0 : index
      %34 = vector.load %arg12[%c0_24, %c0_25] : memref<32x128xf32, #tpu.memory_space<vmem>>, vector<32x128xf32>
      %c0_26 = arith.constant 0 : index
      %c0_27 = arith.constant 0 : index
      %35 = vector.load %arg14[%c0_26, %c0_27] : memref<1x128xf32, #tpu.memory_space<vmem>>, vector<1x128xf32>
      %36 = vector.broadcast %35 : vector<1x128xf32> to vector<32x128xf32>
      %37 = arith.divf %34, %36 : vector<32x128xf32>
      %c0_28 = arith.constant 0 : index
      %c0_29 = arith.constant 0 : index
      %38 = vector.load %arg8[%c0_28, %c0_29] : memref<32x32xf32, #tpu.memory_space<vmem>>, vector<32x32xf32>
      %cst_30 = arith.constant dense<0.000000e+00> : vector<32x128xf32>
      %39 = tpu.matmul %38, %37, %cst_30 {dimension_numbers = #tpu.dot_dimension_numbers<[1], [0], [0], [1], [0, 0, 1, 1], [], []>} : vector<32x32xf32>, vector<32x128xf32>, vector<32x128xf32> -> vector<32x128xf32>
      %c0_31 = arith.constant 0 : index
      %c0_32 = arith.constant 0 : index
      %40 = vector.load %arg9[%c0_31, %c0_32] : memref<32x1xf32, #tpu.memory_space<vmem>>, vector<32x1xf32>
      %41 = vector.broadcast %40 : vector<32x1xf32> to vector<32x128xf32>
      %42 = arith.addf %39, %41 : vector<32x128xf32>
      %c0_33 = arith.constant 0 : index
      %c0_34 = arith.constant 0 : index
      %c0_35 = arith.constant 0 : index
      %43 = vector.load %arg3[%c0_33, %c0_34, %c0_35] : memref<1x32x128xf32, #tpu.memory_space<vmem>>, vector<1x32x128xf32>
      %44 = vector.shape_cast %43 : vector<1x32x128xf32> to vector<32x128xf32>
      %45 = arith.addf %42, %44 : vector<32x128xf32>
      %c0_36 = arith.constant 0 : index
      %c0_37 = arith.constant 0 : index
      %c0_38 = arith.constant 0 : index
      %46 = vector.load %arg10[%c0_36, %c0_37, %c0_38] : memref<1x32x128xf32, #tpu.memory_space<vmem>>, vector<1x32x128xf32>
      %47 = vector.shape_cast %46 : vector<1x32x128xf32> to vector<32x128xf32>
      %48 = vector.shape_cast %45 : vector<32x128xf32> to vector<1x32x128xf32>
      tpu.vector_store %arg10[%c0_36, %c0_37, %c0_38], %48 {strides = array<i32>} : memref<1x32x128xf32, #tpu.memory_space<vmem>>, vector<1x32x128xf32>,
    } else {
    }
    return
  }
  func.func @transform_0(%arg0: i32, %arg1: i32, %arg2: i32) -> (i32, i32, i32) {
    %c0_i32 = arith.constant 0 : i32
    %c0_i32_0 = arith.constant 0 : i32
    return %arg0, %c0_i32, %arg1 : i32, i32, i32
  }
  func.func @transform_1(%arg0: i32, %arg1: i32, %arg2: i32) -> (i32, i32, i32) {
    %c0_i32 = arith.constant 0 : i32
    %c0_i32_0 = arith.constant 0 : i32
    return %arg0, %c0_i32, %arg2 : i32, i32, i32
  }
  func.func @transform_2(%arg0: i32, %arg1: i32, %arg2: i32) -> (i32, i32, i32) {
    %c0_i32 = arith.constant 0 : i32
    %c0_i32_0 = arith.constant 0 : i32
    return %arg0, %c0_i32, %arg2 : i32, i32, i32
  }
  func.func @transform_3(%arg0: i32, %arg1: i32, %arg2: i32) -> (i32, i32, i32) {
    %c0_i32 = arith.constant 0 : i32
    %c0_i32_0 = arith.constant 0 : i32
    %c0_i32_1 = arith.constant 0 : i32
    return %arg0, %c0_i32, %c0_i32_0 : i32, i32, i32
  }
  func.func @transform_4(%arg0: i32, %arg1: i32, %arg2: i32) -> (i32, i32, i32) {
    %c0_i32 = arith.constant 0 : i32
    %c0_i32_0 = arith.constant 0 : i32
    %c0_i32_1 = arith.constant 0 : i32
    return %arg0, %c0_i32, %c0_i32_0 : i32, i32, i32
  }
  func.func @transform_5(%arg0: i32, %arg1: i32, %arg2: i32) -> (i32, i32) {
    %c0_i32 = arith.constant 0 : i32
    %c0_i32_0 = arith.constant 0 : i32
    %c0_i32_1 = arith.constant 0 : i32
    return %c0_i32, %c0_i32_0 : i32, i32
  }
  func.func @transform_6(%arg0: i32, %arg1: i32, %arg2: i32) -> (i32, i32) {
    %c0_i32 = arith.constant 0 : i32
    %c0_i32_0 = arith.constant 0 : i32
    %c0_i32_1 = arith.constant 0 : i32
    return %c0_i32, %c0_i32_0 : i32, i32
  }
  func.func @transform_7(%arg0: i32, %arg1: i32, %arg2: i32) -> (i32, i32, i32) {
    %c0_i32 = arith.constant 0 : i32
    %c0_i32_0 = arith.constant 0 : i32
    return %arg0, %c0_i32, %arg1 : i32, i32, i32
  }
}

</mosaic_0001>

<bundles_post_ra>
// kernel: sanet_forward.5
= control target key start
LH: loop header
LB: loop body
LE: loop exit
PB: predicated region body
PF: predicated region fallthrough
CT: control target
= control target key end

     0   :  { %s594_s9 = smov 0   ;;  %s596_s10 = smov 0   ;;  %s716_s0 = inlined_call_operand.vmem [shape: f32[2,32,256], index: 0, kind: input, shape index: {}]   ;;  %s717_s1 = inlined_call_operand.vmem [shape: f32[2,32,1], index: 1, kind: output, shape index: {0}]   ;;  %s718_s2 = inlined_call_operand.vmem [shape: f32[2,32,1], index: 2, kind: output, shape index: {1}]  }
   0x1   :  { %s598_s11 = smov 0   ;;  %s600_s12 = smov 0  }
   0x2   :  { %s602_s13 = smov 0   ;;  %s604_s14 = smov 0  }
   0x3   :  { %s606_s15 = smov 0  }
   0x4 LB: > { %s22_s16 = sadd.s32 1, %s568_s13  ;;  %s25_s17 = sadd.s32 1, %s572_s14  ;;  %s576_s15 = sphi %s606_s15, %s13_s15   ;;  %s572_s14 = sphi %s604_s14, %s724_s14   ;;  %s568_s13 = sphi %s602_s13, %s723_s13   ;;  %s564_s12 = sphi %s600_s12, %s722_s12   ;;  %s560_s11 = sphi %s598_s11, %s721_s11   ;;  %s556_s10 = sphi %s596_s10, %s720_s10   ;;  %s552_s9 = sphi %s594_s9, %s719_s9  }
   0x5   : > { %p23_p0 = scmp.ge.s32.totalorder %s22_s16, 2  ;;  %p41_p1 = scmp.ne.s32.totalorder %s556_s10, %s552_s9 }
   0x6   : > { %p42_p2 = scmp.eq.s32.totalorder %s576_s15, 0  ;;  %s34_s21 = sadd.s32 1, %s556_s10 }
   0x7   : > { %s726_s16 = smov (%p23_p0, %s22_s16), 0  ;;  %s728_s17 = smov (!%p23_p0, %s25_s17), %s572_s14 }
   0x8   : > { %p43_p3 = por %p42_p2, %p41_p1  ;;  %p27_p4 = scmp.ge.s32.totalorder %s728_s17, 2 }
   0x9   : > { %s30_s18 = ssub.s32 %s568_s13, %s726_s16  ;;  %p441_p6 = scmp.ge.s32.totalorder %s576_s15, 4 }
   0xa   : > { %s730_s17 = smov (%p27_p4, %s728_s17), 0 }
   0xb   : > { %s29_s19 = ssub.s32 %s572_s14, %s730_s17  ;;  %119 = sbr.rel (%p441_p6) target bundleno = 26 (0x1a), region = 16 }
   0xc   : > { %s31_s20 = sor.u32 %s30_s18, %s29_s19 }
   0xd   : > { %p32_p5 = scmp.eq.s32.totalorder %s31_s20, 0 }
   0xf   : > { %s645_s22 = scalar_select %p32_p5, %s556_s10, %s34_s21  }
  0x12   : > { %122 = sbr.rel (!%p43_p3) target bundleno = 26 (0x1a), region = 20  ;;  %s124_s23 = sand.u32 (%p43_p3), 1, %s556_s10  }
  0x13   : > { %s443_s24 = sshll.u32 (%p43_p3), %s572_s14, 3  ;;  %s442_s25 = sshll.u32 (%p43_p3), %s124_s23, 5 }
  0x14   : > { %s128_s26 = sadd.s32 (%p43_p3), %s568_s13, %s443_s24  ;;  %s126_s3 = scalar_lea.vmem (%p43_p3), [#allocation4], %s442_s25 }
  0x15   : > { %s444_s27 = sshll.u32 (%p43_p3), %s128_s26, 3 }
  0x16   : > { %s130_s30 = scalar_lea.vmem (%p43_p3), %s716_s0, %s444_s27 }
  0x17   : > { %v164_v0 = vld [vmem:[%s130_s30] sm:$0xff] (%p43_p3)  ;;  %v166_v1 = vld [vmem:[%s130_s30 + $0x10] sm:$0xff] (%p43_p3) }
  0x18   : > { %v168_v2 = vld [vmem:[%s130_s30 + $0x20] sm:$0xff] (%p43_p3)  ;;  %165 = vst [vmem:[%s126_s3] sm:$0xff] (%p43_p3), %v164_v0  ;;  %167 = vst [vmem:[%s126_s3 + $0x8] sm:$0xff] (%p43_p3), %v166_v1  ;;  %v170_v3 = vld [vmem:[%s130_s30 + $0x30] sm:$0xff] (%p43_p3) }
  0x19   : > { %169 = vst [vmem:[%s126_s3 + $0x10] sm:$0xff] %v168_v2  ;;  %171 = vst [vmem:[%s126_s3 + $0x18] sm:$0xff] %v170_v3 }
  0x1a PF: > { %p445_p7 = scmp.ge.s32.totalorder %s576_s15, 1  ;;  %p176_p8 = scmp.lt.s32.totalorder %s576_s15, 5 }
  0x1c   : > { %p177_p9 = pnand %p445_p7, %p176_p8 }
  0x1d   : > { %s183_s4 = sand.u32 (!%p177_p9), 1, %s552_s9   ;;  %p209_p10 = scmp.lt.s32.totalorder (!%p177_p9), %s564_s12, 1 }
  0x1e   : > { %180 = sbr.rel (%p177_p9) target bundleno = 228 (0xe4), region = 58  ;;  %s446_s5 = sshll.u32 (!%p177_p9), %s183_s4, 5 }
  0x1f   : > { %s185_s23 = scalar_lea.vmem (!%p177_p9), [#allocation4], %s446_s5  ;;  %p451_p11 = scmp.ne.s32.totalorder (!%p177_p9), %s560_s11, 0 }
  0x25   : > { %s732_s12 = smov (!%p209_p10, %s564_s12), 1  ;;  %222 = sbr.rel (%p451_p11) target bundleno = 44 (0x2c), region = 66 }
  0x26   : > { %s455_s6 = sshll.u32 %s732_s12, 5  ;;  %vm223_vm0 = vcmask (!%p451_p11), 7168   ;;  %v578_v4 = vmov (!%p451_p11), 0.0  }
  0x27   : > { %s662_s18 = scalar_lea.vmem %s717_s1, %s455_s6  ;;  %s667_s21 = scalar_lea.vmem %s718_s2, %s455_s6  ;;  %224 = vst.msk [vmem:[#allocation2] sm:$0xff] (!%p451_p11), %vm223_vm0, %v578_v4  ;;  %225 = vst.msk [vmem:[#allocation2 + $0x8] sm:$0xff] (!%p451_p11), %vm223_vm0, %v578_v4 }
  0x28   : > { %226 = vst.msk [vmem:[#allocation2 + $0x10] sm:$0xff] (!%p451_p11), %vm223_vm0, %v578_v4  ;;  %227 = vst.msk [vmem:[#allocation2 + $0x18] sm:$0xff] (!%p451_p11), %vm223_vm0, %v578_v4 }
  0x29   : > { %228 = vst.msk [vmem:[#allocation3] sm:$0xff] (!%p451_p11), %vm223_vm0, %v578_v4  ;;  %229 = vst.msk [vmem:[#allocation3 + $0x8] sm:$0xff] (!%p451_p11), %vm223_vm0, %v578_v4 }
  0x2a   : > { %230 = vst.msk [vmem:[#allocation3 + $0x10] sm:$0xff] (!%p451_p11), %vm223_vm0, %v578_v4  ;;  %231 = vst.msk [vmem:[#allocation3 + $0x18] sm:$0xff] (!%p451_p11), %vm223_vm0, %v578_v4 }
  0x2c PF: > { %v234_v5 = vld [vmem:[%s185_s23 + $0x10] sm:$0xff]  ;;  %v232_v6 = vld [vmem:[%s185_s23] sm:$0xff]  ;;  %v235_v7 = vld [vmem:[%s185_s23 + $0x18] sm:$0xff]  ;;  %vm252_vm1 = vcmask 7168   ;;  %p452_p12 = scmp.ne.s32.totalorder %s560_s11, 1 }
  0x2d   : > { %244 = vadd.xlane.f32.xlu1 %v234_v5  ;;  %240 = vadd.xlane.f32.xlu0 %v232_v6  ;;  %v233_v8 = vld [vmem:[%s185_s23 + $0x8] sm:$0xff]  ;;  %v261_v10 = vmul.f32 %v232_v6, %v232_v6  ;;  %v264_v11 = vmul.f32 %v235_v7, %v235_v7  ;;  %v263_v12 = vmul.f32 %v234_v5, %v234_v5 }
  0x2e   : > { %v262_v9 = vmul.f32 %v233_v8, %v233_v8  ;;  %v236_v14 = vld [vmem:[#allocation2] sm:$0xff]  ;;  %v237_v20 = vld [vmem:[#allocation2 + $0x8] sm:$0xff] }
  0x2f   : > { %v238_v13 = vld [vmem:[#allocation2 + $0x10] sm:$0xff]  ;;  %v239_v19 = vld [vmem:[#allocation2 + $0x18] sm:$0xff] }
  0x30   : > { %v258_v25 = vld [vmem:[#allocation3 + $0x8] sm:$0xff]  ;;  %v257_v26 = vld [vmem:[#allocation3] sm:$0xff] }
  0x31   : > { %246 = vadd.xlane.f32.xlu1 %v235_v7  ;;  %242 = vadd.xlane.f32.xlu0 %v233_v8  ;;  %v260_v31 = vld [vmem:[#allocation3 + $0x18] sm:$0xff]  ;;  %v259_v32 = vld [vmem:[#allocation3 + $0x10] sm:$0xff] }
  0x35   : > { %267 = vadd.xlane.f32.xlu1 %v262_v9  ;;  %265 = vadd.xlane.f32.xlu0 %v261_v10 }
  0x39   : > { %271 = vadd.xlane.f32.xlu1 %v264_v11  ;;  %269 = vadd.xlane.f32.xlu0 %v263_v12 }
  0xba   : > { %v245_v15 = vpop.xlane.xlu1 %244  ;;  %v241_v16 = vpop.xlane.xlu0 %240 }
  0xbb   : > { %v250_v17 = vadd.f32 %v245_v15, %v238_v13  ;;  %v248_v18 = vadd.f32 %v241_v16, %v236_v14 }
  0xbd   : > { %255 = vst.msk [vmem:[#allocation2 + $0x10] sm:$0xff] %vm252_vm1, %v250_v17  ;;  %253 = vst.msk [vmem:[#allocation2] sm:$0xff] %vm252_vm1, %v248_v18 }
  0xbe   : > { %v247_v21 = vpop.xlane.xlu1 %246  ;;  %v243_v22 = vpop.xlane.xlu0 %242 }
  0xbf   : > { %v251_v23 = vadd.f32 %v247_v21, %v239_v19  ;;  %v249_v24 = vadd.f32 %v243_v22, %v237_v20 }
  0xc1   : > { %256 = vst.msk [vmem:[#allocation2 + $0x18] sm:$0xff] %vm252_vm1, %v251_v23  ;;  %254 = vst.msk [vmem:[#allocation2 + $0x8] sm:$0xff] %vm252_vm1, %v249_v24 }
  0xc2   : > { %v268_v27 = vpop.xlane.xlu1 %267  ;;  %v266_v28 = vpop.xlane.xlu0 %265 }
  0xc3   : > { %v274_v29 = vadd.f32 %v268_v27, %v258_v25  ;;  %v273_v30 = vadd.f32 %v266_v28, %v257_v26  ;;  %284 = sbr.rel (%p452_p12) target bundleno = 228 (0xe4), region = 70 }
  0xc4   : > { %v285_v37 = vld [vmem:[#allocation2] sm:$0xff] (!%p452_p12)  ;;  %v287_v39 = vld [vmem:[#allocation2 + $0x10] sm:$0xff] (!%p452_p12) }
  0xc5   : > { %278 = vst.msk [vmem:[#allocation3 + $0x8] sm:$0xff] %vm252_vm1, %v274_v29  ;;  %277 = vst.msk [vmem:[#allocation3] sm:$0xff] %vm252_vm1, %v273_v30  ;;  %v290_v40 = vmul.f32 (!%p452_p12), 0.00390625, %v285_v37  ;;  %v292_v42 = vmul.f32 (!%p452_p12), 0.00390625, %v287_v39 }
  0xc6   : > { %v272_v33 = vpop.xlane.xlu1 %271  ;;  %v270_v34 = vpop.xlane.xlu0 %269 }
  0xc7   : > { %v276_v35 = vadd.f32 %v272_v33, %v260_v31  ;;  %v275_v36 = vadd.f32 %v270_v34, %v259_v32  ;;  %319 = vst.msk [vmem:[%s662_s18] sm:$0xff] (!%p452_p12), %vm252_vm1, %v290_v40  ;;  %321 = vst.msk [vmem:[%s662_s18 + $0x10] sm:$0xff] (!%p452_p12), %vm252_vm1, %v292_v42  ;;  %v298_v45 = vmul.f32 (!%p452_p12), 256.0, %v290_v40  ;;  %v300_v47 = vmul.f32 (!%p452_p12), 256.0, %v292_v42 }
  0xc8   : > { %v286_v38 = vld [vmem:[#allocation2 + $0x8] sm:$0xff] (!%p452_p12)  ;;  %v288_v43 = vld [vmem:[#allocation2 + $0x18] sm:$0xff] (!%p452_p12) }
  0xc9   : > { %280 = vst.msk [vmem:[#allocation3 + $0x18] sm:$0xff] %vm252_vm1, %v276_v35  ;;  %279 = vst.msk [vmem:[#allocation3 + $0x10] sm:$0xff] %vm252_vm1, %v275_v36  ;;  %v291_v41 = vmul.f32 (!%p452_p12), 0.00390625, %v286_v38  ;;  %v293_v44 = vmul.f32 (!%p452_p12), 0.00390625, %v288_v43  ;;  %v302_v52 = vmul.f32 (!%p452_p12), %v298_v45, %v290_v40  ;;  %v304_v54 = vmul.f32 (!%p452_p12), %v300_v47, %v292_v42 }
  0xcb   : > { %320 = vst.msk [vmem:[%s662_s18 + $0x8] sm:$0xff] %vm252_vm1, %v291_v41  ;;  %v299_v46 = vmul.f32 256.0, %v291_v41  ;;  %322 = vst.msk [vmem:[%s662_s18 + $0x18] sm:$0xff] %vm252_vm1, %v293_v44  ;;  %v301_v51 = vmul.f32 256.0, %v293_v44 }
  0xcc   : > { %v294_v48 = vld [vmem:[#allocation3] sm:$0xff]  ;;  %v295_v49 = vld [vmem:[#allocation3 + $0x8] sm:$0xff] }
  0xcd   : > { %v303_v53 = vmul.f32 %v299_v46, %v291_v41  ;;  %v305_v56 = vmul.f32 %v301_v51, %v293_v44  ;;  %v306_v57 = vsub.f32 %v294_v48, %v302_v52 }
  0xcf   : > { %v307_v58 = vsub.f32 %v295_v49, %v303_v53  ;;  %v311_v61 = vmul.f32 0.003921569, %v306_v57 }
  0xd0   : > { %v296_v50 = vld [vmem:[#allocation3 + $0x10] sm:$0xff]  ;;  %v297_v55 = vld [vmem:[#allocation3 + $0x18] sm:$0xff] }
  0xd1   : > { %v308_v59 = vsub.f32 %v296_v50, %v304_v54  ;;  %v309_v60 = vsub.f32 %v297_v55, %v305_v56  ;;  %v312_v62 = vmul.f32 0.003921569, %v307_v58  ;;  %v315_v1 = vadd.f32 1e-05, %v311_v61 }
  0xd3   : > { %v313_v63 = vmul.f32 0.003921569, %v308_v59  ;;  %v314_v0 = vmul.f32 0.003921569, %v309_v60  ;;  %v316_v2 = vadd.f32 1e-05, %v312_v62  ;;  %514 = vrsqrt.f32 %v315_v1 }
  0xd5   : > { %v317_v3 = vadd.f32 1e-05, %v313_v63  ;;  %v318_v4 = vadd.f32 1e-05, %v314_v0  ;;  %516 = vrsqrt.f32 %v316_v2 }
  0xd7   : > { %518 = vrsqrt.f32 %v317_v3 }
  0xd8   : > { %520 = vrsqrt.f32 %v318_v4 }
  0xdd   : > { %v515_v5 = vpop.eup %514 }
  0xde   : > { %327 = vst.msk [vmem:[%s667_s21] sm:$0xff] %vm252_vm1, %v515_v5 }
  0xdf   : > { %v517_v6 = vpop.eup %516 }
  0xe0   : > { %328 = vst.msk [vmem:[%s667_s21 + $0x8] sm:$0xff] %vm252_vm1, %v517_v6 }
  0xe1   : > { %v519_v7 = vpop.eup %518 }
  0xe2   : > { %v521_v8 = vpop.eup %520  ;;  %329 = vst.msk [vmem:[%s667_s21 + $0x10] sm:$0xff] %vm252_vm1, %v519_v7 }
  0xe3   : > { %330 = vst.msk [vmem:[%s667_s21 + $0x18] sm:$0xff] %vm252_vm1, %v521_v8 }
  0xe4 PF: > { %s13_s15 = sadd.s32 1, %s576_s15   ;;  %s719_s9 = smov %s556_s10 }
  0xe5   : > { %p10_p13 = scmp.ge.s32.totalorder %s13_s15, 6   ;;  %s720_s10 = smov %s645_s22 }
  0xe6   : > { %s721_s11 = smov %s568_s13  ;;  %s722_s12 = smov %s572_s14 }
  0xe7   : > { %s723_s13 = smov %s726_s16  ;;  %s724_s14 = smov %s730_s17 }
  0xe8   :  { %12 = sbr.rel (!%p10_p13) target bundleno = 4 (0x4), region = 117 }

// kernel: sanet_forward.6
= control target key start
LH: loop header
LB: loop body
LE: loop exit
PB: predicated region body
PF: predicated region fallthrough
CT: control target
= control target key end

     0   :  { %s957_s15 = smov 0   ;;  %s959_s16 = smov 0   ;;  %s1101_s0 = inlined_call_operand.vmem [shape: f32[2,32,256], index: 0, kind: input, shape index: {}]   ;;  %s1102_s1 = inlined_call_operand.vmem [shape: f32[2,64,32], index: 1, kind: input, shape index: {}]   ;;  %s1103_s2 = inlined_call_operand.vmem [shape: f32[2,64,1], index: 2, kind: input, shape index: {}]   ;;  %s1104_s3 = inlined_call_operand.vmem [shape: f32[2,32,256], index: 3, kind: output, shape index: {0}]   ;;  %s1105_s4 = inlined_call_operand.vmem [shape: f32[2,32,256], index: 4, kind: output, shape index: {1}]  }
   0x1   :  { %s961_s17 = smov 0   ;;  %s963_s18 = smov 0  }
   0x2   :  { %s965_s19 = smov 0   ;;  %s967_s20 = smov 0  }
   0x3   :  { %s969_s21 = smov 0  }
   0x4 LB: > { %s24_s22 = sadd.s32 1, %s921_s19  ;;  %s27_s23 = sadd.s32 1, %s925_s20  ;;  %s929_s21 = sphi %s969_s21, %s15_s21   ;;  %s925_s20 = sphi %s967_s20, %s1112_s20   ;;  %s921_s19 = sphi %s965_s19, %s1111_s19   ;;  %s917_s18 = sphi %s963_s18, %s1110_s18   ;;  %s913_s17 = sphi %s961_s17, %s1109_s17   ;;  %s909_s16 = sphi %s959_s16, %s1108_s16   ;;  %s905_s15 = sphi %s957_s15, %s1107_s15  }
   0x5   : > { %p25_p0 = scmp.ge.s32.totalorder %s24_s22, 2  ;;  %s739_s24 = sadd.s32 4294967295, %s929_s21  }
   0x6   : > { %p43_p1 = scmp.ne.s32.totalorder %s909_s16, %s905_s15  ;;  %p44_p2 = scmp.eq.s32.totalorder %s929_s21, 0 }
   0x7   : > { %s1114_s22 = smov (%p25_p0, %s24_s22), 0  ;;  %s1116_s23 = smov (!%p25_p0, %s27_s23), %s925_s20 }
   0x8   : > { %p29_p3 = scmp.ge.s32.totalorder %s1116_s23, 2  ;;  %p127_p4 = scmp.eq.s32.totalorder %s739_s24, 3 }
   0x9   : > { %s32_s25 = ssub.s32 %s921_s19, %s1114_s22  ;;  %p45_p5 = por %p44_p2, %p43_p1 }
   0xa   : > { %s1118_s23 = smov (%p29_p3, %s1116_s23), 0  ;;  %p1005_p6 = por %p127_p4, %p43_p1 }
   0xb   : > { %s31_s27 = ssub.s32 %s925_s20, %s1118_s23  ;;  %s36_s29 = sadd.s32 1, %s909_s16 }
   0xc   : > { %s33_s28 = sor.u32 %s32_s25, %s31_s27  ;;  %p742_p8 = scmp.ge.s32.totalorder %s929_s21, 4 }
   0xd   : > { %p34_p7 = scmp.eq.s32.totalorder %s33_s28, 0 }
   0xe   : > { %177 = sbr.rel (%p742_p8) target bundleno = 29 (0x1d), region = 16 }
   0xf   : > { %s1013_s30 = scalar_select %p34_p7, %s909_s16, %s36_s29  }
  0x15   : > { %180 = sbr.rel (!%p45_p5) target bundleno = 29 (0x1d), region = 20  ;;  %s182_s5 = sand.u32 (%p45_p5), 1, %s909_s16  }
  0x16   : > { %s744_s6 = sshll.u32 (%p45_p5), %s925_s20, 3  ;;  %s743_s7 = sshll.u32 (%p45_p5), %s182_s5, 5 }
  0x17   : > { %s186_s8 = sadd.s32 (%p45_p5), %s921_s19, %s744_s6  ;;  %s184_s13 = scalar_lea.vmem (%p45_p5), [#allocation2], %s743_s7 }
  0x18   : > { %s745_s9 = sshll.u32 (%p45_p5), %s186_s8, 3 }
  0x19   : > { %s188_s12 = scalar_lea.vmem (%p45_p5), %s1101_s0, %s745_s9 }
  0x1a   : > { %v222_v0 = vld [vmem:[%s188_s12] sm:$0xff] (%p45_p5)  ;;  %v224_v1 = vld [vmem:[%s188_s12 + $0x10] sm:$0xff] (%p45_p5) }
  0x1b   : > { %v226_v2 = vld [vmem:[%s188_s12 + $0x20] sm:$0xff] (%p45_p5)  ;;  %223 = vst [vmem:[%s184_s13] sm:$0xff] (%p45_p5), %v222_v0  ;;  %225 = vst [vmem:[%s184_s13 + $0x8] sm:$0xff] (%p45_p5), %v224_v1  ;;  %v228_v3 = vld [vmem:[%s188_s12 + $0x30] sm:$0xff] (%p45_p5) }
  0x1c   : > { %227 = vst [vmem:[%s184_s13 + $0x10] sm:$0xff] %v226_v2  ;;  %229 = vst [vmem:[%s184_s13 + $0x18] sm:$0xff] %v228_v3 }
  0x1d PF: > { %p746_p9 = scmp.ge.s32.totalorder %s929_s21, 1  ;;  %p250_p10 = scmp.lt.s32.totalorder %s929_s21, 5 }
  0x1f   : > { %p251_p11 = pnand %p746_p9, %p250_p10 }
  0x20   : > { %s257_s14 = sand.u32 (!%p251_p11), 1, %s905_s15   ;;  %p295_p12 = scmp.lt.s32.totalorder (!%p251_p11), %s917_s18, 1  ;;  %v931_v4 = vmov (!%p251_p11), 0   ;;  %vm365_vm0 = vcmask (!%p251_p11), 261120  }
  0x21   : > { %254 = sbr.rel (%p251_p11) target bundleno = 282 (0x11a), region = 66  ;;  %s1026_s24 = sshll.u32 (!%p251_p11), %s257_s14, 5  ;;  %874 = vset.pattern.permute.xlu1 (!%p251_p11), %v931_v4  ;;  %873 = vset.pattern.permute.xlu0 (!%p251_p11), %v931_v4 }
  0x22   : > { %s259_s25 = scalar_lea.vmem (!%p251_p11), [#allocation2], %s1026_s24  ;;  %s288_s9 = scalar_lea.vmem (!%p251_p11), [#allocation3], %s1026_s24 }
  0x23   : > { %v313_v5 = vld [vmem:[%s259_s25] sm:$0xff] (!%p251_p11)  ;;  %v314_v6 = vld [vmem:[%s259_s25 + $0x8] sm:$0xff] (!%p251_p11)  ;;  %v315_v7 = vld [vmem:[%s259_s25 + $0x10] sm:$0xff] (!%p251_p11)  ;;  %s1056_s10 = scalar_lea.vmem (!%p251_p11), [#allocation4], %s1026_s24 }
  0x24   : > { %v804_v8 = vpack.c.bf16 (!%p251_p11), %v314_v6, %v313_v5  ;;  %v316_v9 = vld [vmem:[%s259_s25 + $0x18] sm:$0xff] (!%p251_p11) }
  0x25   : > { %v808_v10 = vpack.c.bf16 (!%p251_p11), %v316_v9, %v315_v7 }
  0x26   : > { %805 = vmatprep.subr.bf16.mxu0 (!%p251_p11), %v804_v8  ;;  %812 = vmatprep.subr.bf16.mxu1 (!%p251_p11), %v804_v8 }
  0x27   : > { %807 = vmatpush3.bf16.msra.mxu0 (!%p251_p11), %v804_v8  ;;  %814 = vmatpush3.bf16.msra.mxu1 (!%p251_p11), %v804_v8 }
  0x28   : > { %s296_s27 = scalar_select %p295_p12, %s917_s18, 1  ;;  %809 = vmatprep.subr.bf16.mxu0 %v808_v10  ;;  %813 = vmatprep.subr.bf16.mxu1 %v808_v10 }
  0x29   : > { %s764_s11 = sshll.u32 (%p1005_p6), %s917_s18, 3 }
  0x2a   : > { %s770_s28 = sshll.u32 %s296_s27, 6  ;;  %s515_s12 = sadd.s32 (%p1005_p6), %s913_s17, %s764_s11 }
  0x2b   : > { %s299_s5 = scalar_lea.vmem %s1102_s1, %s770_s28  ;;  %s1036_s8 = scalar_lea.vmem %s1103_s2, %s770_s28  ;;  %811 = vmatpush3.bf16.msra.mxu0 %v808_v10  ;;  %815 = vmatpush3.bf16.msra.mxu1 %v808_v10 }
  0x2c   : > { %v305_v11 = vld [vmem:[%s299_s5] sm:$0xff]  ;;  %v319_v13 = vld [vmem:[%s1036_s8 + $0x10] sm:$0xff]  ;;  %v306_v15 = vld [vmem:[%s299_s5 + $0x8] sm:$0xff]  ;;  %s765_s13 = sshll.u32 (%p1005_p6), %s515_s12, 3 }
  0x2d   : > { %v309_v12 = vld [vmem:[%s299_s5 + $0x20] sm:$0xff]  ;;  %792 = vmatprep.mubr.msk.f32.mxu0 %vm365_vm0, %v305_v11  ;;  %337 = vperm.xlu1 %874, %v319_v13   ;;  %v310_v16 = vld [vmem:[%s299_s5 + $0x28] sm:$0xff]  ;;  %v307_v17 = vld [vmem:[%s299_s5 + $0x10] sm:$0xff]  ;;  %s517_s25 = scalar_lea.vmem (%p1005_p6), %s1104_s3, %s765_s13 }
  0x2e   : > { %798 = vmatprep.mubr.msk.f32.mxu1 %vm365_vm0, %v309_v12  ;;  %v317_v14 = vld [vmem:[%s1036_s8] sm:$0xff]  ;;  %v311_v18 = vld [vmem:[%s299_s5 + $0x30] sm:$0xff]  ;;  %v320_v19 = vld [vmem:[%s1036_s8 + $0x18] sm:$0xff]  ;;  %793 = vmatmul.mubr.msk.f32.vlgmr.msra.gmra.mrb[0].mxu0 %vm365_vm0, %v306_v15 }
  0x2f   : > { %327 = vperm.xlu0 %873, %v317_v14   ;;  %v318_v20 = vld [vmem:[%s1036_s8 + $0x8] sm:$0xff]  ;;  %799 = vmatmul.mubr.msk.f32.vlgmr.msra.gmra.mrb[0].mxu1 %vm365_vm0, %v310_v16  ;;  %v308_v21 = vld [vmem:[%s299_s5 + $0x18] sm:$0xff]  ;;  %v321_v24 = vld [vmem:[%s1036_s8 + $0x20] sm:$0xff] }
  0x30   : > { %795 = vmatprep.mubr.msk.f32.mxu0 %vm365_vm0, %v307_v17  ;;  %801 = vmatprep.mubr.msk.f32.mxu1 %vm365_vm0, %v311_v18  ;;  %v312_v22 = vld [vmem:[%s299_s5 + $0x38] sm:$0xff]  ;;  %v322_v23 = vld [vmem:[%s1036_s8 + $0x28] sm:$0xff]  ;;  %v323_v26 = vld [vmem:[%s1036_s8 + $0x30] sm:$0xff] }
  0x31   : > { %342 = vperm.xlu1 %874, %v320_v19   ;;  %v324_v25 = vld [vmem:[%s1036_s8 + $0x38] sm:$0xff] }
  0x32   : > { %796 = vmatmul.mubr.msk.f32.gmra.mrb[2].mxu0 %vm365_vm0, %v308_v21 }
  0x33   : > { %332 = vperm.xlu0 %873, %v318_v20   ;;  %802 = vmatmul.mubr.msk.f32.gmra.mrb[2].mxu1 %vm365_vm0, %v312_v22 }
  0x35   : > { %352 = vperm.xlu1 %874, %v322_v23  }
  0x37   : > { %347 = vperm.xlu0 %873, %v321_v24  }
  0x39   : > { %362 = vperm.xlu1 %874, %v324_v25  }
  0x3b   : > { %357 = vperm.xlu0 %873, %v323_v26  }
  0xac   : > { %v338_v27 = vpop.permute.xlu1 %337 }
  0xae   : > { %v328_v28 = vpop.permute.xlu0 %327 }
  0xb0   : > { %v343_v29 = vpop.permute.xlu1 %342 }
  0xb2   : > { %v333_v30 = vpop.permute.xlu0 %332 }
  0xb4   : > { %v353_v31 = vpop.permute.xlu1 %352 }
  0xb6   : > { %v348_v32 = vpop.permute.xlu0 %347 }
  0xb8   : > { %v363_v41 = vpop.permute.xlu1 %362 }
  0xba   : > { %v358_v42 = vpop.permute.xlu0 %357 }
 0x101   : > { %v794_v33 = vpop.f32.mrb[0].mxu0 }
 0x102   : > { %v800_v34 = vpop.f32.mrb[0].mxu1  ;;  %v462_v35 = vadd.f32 %v794_v33, %v333_v30  ;;  %v456_v37 = vpop.f32.mrb[1].mxu0 }
 0x103   : > { %v482_v36 = vadd.f32 %v800_v34, %v353_v31  ;;  %v476_v38 = vpop.f32.mrb[1].mxu1  ;;  %v457_v39 = vadd.f32 %v456_v37, %v328_v28 }
 0x104   : > { %v477_v40 = vadd.f32 %v476_v38, %v348_v32  ;;  %496 = vst [vmem:[%s288_s9 + $0x8] sm:$0xff] %v462_v35  ;;  %513 = sbr.rel (!%p1005_p6) target bundleno = 274 (0x112), region = 74 }
 0x105   : > { %500 = vst [vmem:[%s1056_s10 + $0x8] sm:$0xff] %v482_v36  ;;  %495 = vst [vmem:[%s288_s9] sm:$0xff] %v457_v39  ;;  %v797_v43 = vpop.f32.mrb[2].mxu0 }
 0x106   : > { %499 = vst [vmem:[%s1056_s10] sm:$0xff] %v477_v40  ;;  %v803_v44 = vpop.f32.mrb[2].mxu1  ;;  %v472_v45 = vadd.f32 %v797_v43, %v343_v29  ;;  %v466_v47 = vpop.f32.mrb[3].mxu0 }
 0x107   : > { %v492_v46 = vadd.f32 %v803_v44, %v363_v41  ;;  %v486_v48 = vpop.f32.mrb[3].mxu1  ;;  %v467_v49 = vadd.f32 %v466_v47, %v338_v27 }
 0x108   : > { %v487_v50 = vadd.f32 %v486_v48, %v358_v42  ;;  %498 = vst [vmem:[%s288_s9 + $0x18] sm:$0xff] %v472_v45 }
 0x109   : > { %502 = vst [vmem:[%s1056_s10 + $0x18] sm:$0xff] %v492_v46  ;;  %497 = vst [vmem:[%s288_s9 + $0x10] sm:$0xff] %v467_v49 }
 0x10a   : > { %501 = vst [vmem:[%s1056_s10 + $0x10] sm:$0xff] %v487_v50 }
 0x10b   : > { %v553_v52 = vld [vmem:[%s288_s9 + $0x8] sm:$0xff] }
 0x10c   : > { %v551_v51 = vld [vmem:[%s288_s9] sm:$0xff]  ;;  %554 = vst [vmem:[%s517_s25 + $0x10] sm:$0xff] %v553_v52 }
 0x10d   : > { %552 = vst [vmem:[%s517_s25] sm:$0xff] %v551_v51 }
 0x10f   : > { %v557_v54 = vld [vmem:[%s288_s9 + $0x18] sm:$0xff] }
 0x110   : > { %v555_v53 = vld [vmem:[%s288_s9 + $0x10] sm:$0xff]  ;;  %558 = vst [vmem:[%s517_s25 + $0x30] sm:$0xff] %v557_v54 }
 0x111   : > { %556 = vst [vmem:[%s517_s25 + $0x20] sm:$0xff] %v555_v53 }
 0x112 PF: > { %564 = sbr.rel (!%p1005_p6) target bundleno = 282 (0x11a), region = 112  ;;  %s766_s27 = sshll.u32 (%p1005_p6), %s917_s18, 3 }
 0x113   : > { %s566_s28 = sadd.s32 (%p1005_p6), %s913_s17, %s766_s27  ;;  %v604_v56 = vld [vmem:[%s1056_s10 + $0x8] sm:$0xff] (%p1005_p6) }
 0x114   : > { %v602_v55 = vld [vmem:[%s1056_s10] sm:$0xff] (%p1005_p6)  ;;  %s767_s29 = sshll.u32 (%p1005_p6), %s566_s28, 3 }
 0x115   : > { %s568_s6 = scalar_lea.vmem (%p1005_p6), %s1105_s4, %s767_s29 }
 0x116   : > { %603 = vst [vmem:[%s568_s6] sm:$0xff] (%p1005_p6), %v602_v55  ;;  %605 = vst [vmem:[%s568_s6 + $0x10] sm:$0xff] (%p1005_p6), %v604_v56 }
 0x117   : > { %v608_v58 = vld [vmem:[%s1056_s10 + $0x18] sm:$0xff] (%p1005_p6) }
 0x118   : > { %v606_v57 = vld [vmem:[%s1056_s10 + $0x10] sm:$0xff] (%p1005_p6)  ;;  %609 = vst [vmem:[%s568_s6 + $0x30] sm:$0xff] (%p1005_p6), %v608_v58 }
 0x119   : > { %607 = vst [vmem:[%s568_s6 + $0x20] sm:$0xff] %v606_v57 }
 0x11a PF: > { %s15_s21 = sadd.s32 1, %s929_s21   ;;  %s1107_s15 = smov %s909_s16 }
 0x11b   : > { %p12_p13 = scmp.ge.s32.totalorder %s15_s21, 6   ;;  %s1108_s16 = smov %s1013_s30 }
 0x11c   : > { %s1109_s17 = smov %s921_s19  ;;  %s1110_s18 = smov %s925_s20 }
 0x11d   : > { %s1111_s19 = smov %s1114_s22  ;;  %s1112_s20 = smov %s1118_s23 }
 0x11e   :  { %14 = sbr.rel (!%p12_p13) target bundleno = 4 (0x4), region = 199 }

// kernel: sanet_forward.7
= control target key start
LH: loop header
LB: loop body
LE: loop exit
PB: predicated region body
PF: predicated region fallthrough
CT: control target
= control target key end

     0   :  { %s2349_s0 = inlined_call_operand.vmem [shape: f32[2,32,256], index: 0, kind: input, shape index: {}]   ;;  %s2350_s1 = inlined_call_operand.vmem [shape: f32[2,32,256], index: 1, kind: input, shape index: {}]   ;;  %s2351_s2 = inlined_call_operand.vmem [shape: f32[2,32,256], index: 2, kind: input, shape index: {}]   ;;  %s2352_s3 = inlined_call_operand.vmem [shape: f32[2,32,32], index: 3, kind: input, shape index: {}]   ;;  %s2353_s4 = inlined_call_operand.vmem [shape: f32[2,32,1], index: 4, kind: input, shape index: {}]   ;;  %s2354_s5 = inlined_call_operand.vmem [shape: f32[32,32], index: 5, kind: input, shape index: {}]   ;;  %s2355_s6 = inlined_call_operand.vmem [shape: f32[32,1], index: 6, kind: input, shape index: {}]   ;;  %s2356_s7 = inlined_call_operand.vmem [shape: f32[2,32,256], index: 7, kind: output, shape index: {}]  }
   0x1   :  { %2361 = sst [smem:[#allocation15_spill]] %s2349_s0 }
   0x2   :  { %2362 = sst [smem:[#allocation16_spill]] %s2350_s1 }
   0x3   :  { %2363 = sst [smem:[#allocation17_spill]] %s2356_s7 }
   0x4   :  { %s2012_s24 = smov 0   ;;  %s2014_s25 = smov 0  }
   0x5   :  { %s2016_s26 = smov 0   ;;  %s2018_s27 = smov 0  }
   0x6   :  { %s2020_s28 = smov 0   ;;  %s2022_s29 = smov 0  }
   0x7   :  { %s2024_s30 = smov 0   ;;  %s2026_s8 = smov 0  }
   0x8   :  { %s2028_s9 = smov 0   ;;  %s2030_s10 = smov 0  }
   0x9   :  { %s2032_s11 = smov 0  }
   0xa LB: > { %2364 = sst [smem:[#allocation10_spill]] %s1946_s29  ;;  %s29_s12 = sadd.s32 1, %s1954_s8  ;;  %s1966_s11 = sphi %s2032_s11, %s17_s11   ;;  %s1962_s10 = sphi %s2030_s10, %s2389_s10   ;;  %s1958_s9 = sphi %s2028_s9, %s2388_s9   ;;  %s1954_s8 = sphi %s2026_s8, %s2387_s8   ;;  %s1950_s30 = sphi %s2024_s30, %s2386_s30   ;;  %s1946_s29 = sphi %s2022_s29, %s2385_s29   ;;  %s1942_s28 = sphi %s2020_s28, %s2384_s28   ;;  %s1938_s27 = sphi %s2018_s27, %s2383_s27   ;;  %s1934_s26 = sphi %s2016_s26, %s2382_s26   ;;  %s1930_s25 = sphi %s2014_s25, %s2381_s25   ;;  %s1926_s24 = sphi %s2012_s24, %s2380_s24  }
   0xb   : > { %p30_p0 = scmp.ge.s32.totalorder %s29_s12, 2  ;;  %s32_s13 = sadd.s32 1, %s1958_s9 }
   0xc   : > { %p52_p1 = scmp.ne.s32.totalorder %s1938_s27, %s1934_s26  ;;  %p53_p2 = scmp.eq.s32.totalorder %s1966_s11, 0 }
   0xd   : > { %s2391_s12 = smov (%p30_p0, %s29_s12), 0  ;;  %s2393_s13 = smov (!%p30_p0, %s32_s13), %s1958_s9 }
   0xe   : > { %2365 = sst [smem:[#allocation11_spill]] %s2391_s12  ;;  %p34_p3 = scmp.ge.s32.totalorder %s2393_s13, 2 }
   0xf   : > { %s36_s14 = sadd.s32 1, %s1962_s10  ;;  %s1473_s15 = sadd.s32 4294967295, %s1966_s11  }
  0x10   : > { %p2080_p4 = por %p53_p2, %p52_p1  ;;  %s2395_s13 = smov (%p34_p3, %s2393_s13), 0 }
  0x11   : > { %2367 = sst [smem:[#allocation12_spill]] %s2395_s13  ;;  %s2397_s14 = smov (!%p34_p3, %s36_s14), %s1962_s10 }
  0x12   : > { %s69_s17 = ssub.s32 %s1954_s8, %s2391_s12  ;;  %p80_p5 = scmp.ne.s32.totalorder %s1930_s25, %s1926_s24 }
  0x13   : > { %p38_p6 = scmp.ge.s32.totalorder %s2397_s14, 2  ;;  %p234_p7 = scmp.eq.s32.totalorder %s1473_s15, 7 }
  0x14   : > { %s41_s18 = ssub.s32 %s1958_s9, %s2395_s13  ;;  %p2093_p8 = por %p80_p5, %p53_p2 }
  0x15   : > { %s2399_s14 = smov (%p38_p6, %s2397_s14), 0  ;;  %s45_s20 = sadd.s32 1, %s1938_s27 }
  0x16   : > { %2369 = sst [smem:[#allocation13_spill]] %s2399_s14  ;;  %p2103_p9 = por %p234_p7, %p52_p1 }
  0x17   : > { %s40_s22 = ssub.s32 %s1962_s10, %s2399_s14  ;;  %s73_s23 = sadd.s32 1, %s1930_s25 }
  0x18   : > { %s2370_s21 = scalar_select %p2103_p9, 1, 0 }
  0x19   : > { %s42_s12 = sor.u32 %s41_s18, %s40_s22  ;;  %s70_s7 = sor.u32 %s69_s17, %s40_s22 }
  0x1a   : > { %2371 = sst [smem:[#allocation14_spill]] %s2370_s21  ;;  %p43_p10 = scmp.eq.s32.totalorder %s42_s12, 0 }
  0x1b   : > { %p71_p11 = scmp.eq.s32.totalorder %s70_s7, 0  ;;  %p1476_p12 = scmp.ge.s32.totalorder %s1966_s11, 8 }
  0x1c   : > { %s2111_s15 = scalar_select %p43_p10, %s1938_s27, %s45_s20  }
  0x1d   : > { %s2114_s13 = scalar_select %p71_p11, %s1930_s25, %s73_s23  }
  0x1e   : > { %262 = sbr.rel (%p1476_p12) target bundleno = 69 (0x45), region = 24 }
  0x25   : > { %265 = sbr.rel (!%p2080_p4) target bundleno = 49 (0x31), region = 28  ;;  %s267_s29 = sand.u32 (%p2080_p4), 1, %s1938_s27  }
  0x26   : > { %s1478_s14 = sshll.u32 (%p2080_p4), %s1962_s10, 3  ;;  %s1477_s21 = sshll.u32 (%p2080_p4), %s267_s29, 5 }
  0x27   : > { %s271_s18 = sadd.s32 (%p2080_p4), %s1958_s9, %s1478_s14  ;;  %s2372_s0 = sld [smem:[#allocation15_spill]] (%p2080_p4) }
  0x28   : > { %s1479_s17 = sshll.u32 (%p2080_p4), %s271_s18, 3  ;;  %s269_s22 = scalar_lea.vmem (%p2080_p4), [#allocation6], %s1477_s21 }
  0x2d   : > { %s273_s20 = scalar_lea.vmem %s2372_s0, %s1479_s17 }
  0x2e   : > { %v307_v0 = vld [vmem:[%s273_s20] sm:$0xff]  ;;  %v309_v1 = vld [vmem:[%s273_s20 + $0x10] sm:$0xff] }
  0x2f   : > { %v311_v2 = vld [vmem:[%s273_s20 + $0x20] sm:$0xff]  ;;  %308 = vst [vmem:[%s269_s22] sm:$0xff] %v307_v0  ;;  %310 = vst [vmem:[%s269_s22 + $0x8] sm:$0xff] %v309_v1  ;;  %v313_v3 = vld [vmem:[%s273_s20 + $0x30] sm:$0xff] }
  0x30   : > { %312 = vst [vmem:[%s269_s22 + $0x10] sm:$0xff] %v311_v2  ;;  %314 = vst [vmem:[%s269_s22 + $0x18] sm:$0xff] %v313_v3 }
  0x31 PF: > { %320 = sbr.rel (!%p2093_p8) target bundleno = 61 (0x3d), region = 66  ;;  %s322_s29 = sand.u32 (%p2093_p8), 1, %s1930_s25  }
  0x32   : > { %s1481_s14 = sshll.u32 (%p2093_p8), %s1962_s10, 3  ;;  %s1480_s16 = sshll.u32 (%p2093_p8), %s322_s29, 5 }
  0x33   : > { %s326_s23 = sadd.s32 (%p2093_p8), %s1954_s8, %s1481_s14  ;;  %s2373_s1 = sld [smem:[#allocation16_spill]] (%p2093_p8) }
  0x34   : > { %s1482_s18 = sshll.u32 (%p2093_p8), %s326_s23, 3  ;;  %s324_s7 = scalar_lea.vmem (%p2093_p8), [#allocation7], %s1480_s16 }
  0x39   : > { %s328_s21 = scalar_lea.vmem %s2373_s1, %s1482_s18 }
  0x3a   : > { %v362_v4 = vld [vmem:[%s328_s21] sm:$0xff]  ;;  %v364_v5 = vld [vmem:[%s328_s21 + $0x10] sm:$0xff] }
  0x3b   : > { %v366_v6 = vld [vmem:[%s328_s21 + $0x20] sm:$0xff]  ;;  %363 = vst [vmem:[%s324_s7] sm:$0xff] %v362_v4  ;;  %365 = vst [vmem:[%s324_s7 + $0x8] sm:$0xff] %v364_v5  ;;  %v368_v7 = vld [vmem:[%s328_s21 + $0x30] sm:$0xff] }
  0x3c   : > { %367 = vst [vmem:[%s324_s7 + $0x10] sm:$0xff] %v366_v6  ;;  %369 = vst [vmem:[%s324_s7 + $0x18] sm:$0xff] %v368_v7 }
  0x3d PF: > { %375 = sbr.rel (!%p2093_p8) target bundleno = 69 (0x45), region = 104  ;;  %s377_s20 = sand.u32 (%p2093_p8), 1, %s1930_s25  }
  0x3e   : > { %s1484_s22 = sshll.u32 (%p2093_p8), %s1962_s10, 3  ;;  %s1483_s29 = sshll.u32 (%p2093_p8), %s377_s20, 5 }
  0x3f   : > { %s381_s14 = sadd.s32 (%p2093_p8), %s1954_s8, %s1484_s22  ;;  %s379_s12 = scalar_lea.vmem (%p2093_p8), [#allocation8], %s1483_s29 }
  0x40   : > { %s1485_s23 = sshll.u32 (%p2093_p8), %s381_s14, 3 }
  0x41   : > { %s383_s16 = scalar_lea.vmem (%p2093_p8), %s2351_s2, %s1485_s23 }
  0x42   : > { %v417_v8 = vld [vmem:[%s383_s16] sm:$0xff] (%p2093_p8)  ;;  %v419_v9 = vld [vmem:[%s383_s16 + $0x10] sm:$0xff] (%p2093_p8) }
  0x43   : > { %v421_v10 = vld [vmem:[%s383_s16 + $0x20] sm:$0xff] (%p2093_p8)  ;;  %418 = vst [vmem:[%s379_s12] sm:$0xff] (%p2093_p8), %v417_v8  ;;  %420 = vst [vmem:[%s379_s12 + $0x8] sm:$0xff] (%p2093_p8), %v419_v9  ;;  %v423_v11 = vld [vmem:[%s383_s16 + $0x30] sm:$0xff] (%p2093_p8) }
  0x44   : > { %422 = vst [vmem:[%s379_s12 + $0x10] sm:$0xff] %v421_v10  ;;  %424 = vst [vmem:[%s379_s12 + $0x18] sm:$0xff] %v423_v11 }
  0x45 PF: > { %p1486_p13 = scmp.ge.s32.totalorder %s1966_s11, 1  ;;  %p445_p0 = scmp.lt.s32.totalorder %s1966_s11, 9 }
  0x47   : > { %p446_p1 = pnand %p1486_p13, %p445_p0 }
  0x48   : > { %s452_s19 = sand.u32 (!%p446_p1), 1, %s1934_s26   ;;  %s459_s21 = sand.u32 (!%p446_p1), 1, %s1926_s24  }
  0x49   : > { %449 = sbr.rel (%p446_p1) target bundleno = 1250 (0x4e2), region = 150  ;;  %s1487_s7 = sshll.u32 (!%p446_p1), %s452_s19, 5 }
  0x4a   : > { %s1488_s20 = sshll.u32 (!%p446_p1), %s459_s21, 5  ;;  %p514_p2 = scmp.lt.s32.totalorder (!%p446_p1), %s1950_s30, 1 }
  0x4b   : > { %s2157_s0 = scalar_lea.vmem (!%p446_p1), [#allocation6], %s1487_s7  ;;  %s2159_s1 = scalar_lea.vmem (!%p446_p1), [#allocation7], %s1488_s20 }
  0x4c   : > { %s2161_s24 = scalar_lea.vmem (!%p446_p1), [#allocation8], %s1488_s20  ;;  %s2163_s26 = scalar_lea.vmem (!%p446_p1), [#allocation9], %s1487_s7 }
  0x4d   : > { %p1495_p3 = scmp.ne.s32.totalorder (!%p446_p1), %s1942_s28, 0 }
  0x50   : > { %s515_s22 = scalar_select %p514_p2, %s1950_s30, 1 }
  0x51   : > { %527 = sbr.rel (%p1495_p3) target bundleno = 309 (0x135), region = 166  ;;  %v532_v12 = vld [vmem:[%s2157_s0] sm:$0xff] (!%p1495_p3)  ;;  %v533_v13 = vld [vmem:[%s2157_s0 + $0x8] sm:$0xff] (!%p1495_p3)  ;;  %v534_v14 = vld [vmem:[%s2157_s0 + $0x10] sm:$0xff] (!%p1495_p3)  ;;  %vm560_vm0 = vcmask (!%p1495_p3), 261120   ;;  %v1968_v19 = vmov (!%p1495_p3), 0  }
  0x52   : > { %s1527_s29 = sshll.u32 %s515_s22, 5  ;;  %v1683_v15 = vpack.c.bf16 (!%p1495_p3), %v533_v13, %v532_v12  ;;  %v535_v16 = vld [vmem:[%s2157_s0 + $0x18] sm:$0xff] (!%p1495_p3)  ;;  %1841 = vset.pattern.permute.xlu1 (!%p1495_p3), %v1968_v19  ;;  %1840 = vset.pattern.permute.xlu0 (!%p1495_p3), %v1968_v19  ;;  %v1969_v27 = vmov (!%p1495_p3), -inf   ;;  %v1970_v28 = vmov (!%p1495_p3), 0.0  }
  0x53   : > { %s2150_s18 = scalar_lea.vmem %s2352_s3, %s1527_s29  ;;  %s2155_s12 = scalar_lea.vmem %s2353_s4, %s1527_s29  ;;  %v1687_v20 = vpack.c.bf16 (!%p1495_p3), %v535_v16, %v534_v14  ;;  %662 = vst [vmem:[#allocation4] sm:$0x1] (!%p1495_p3), %v1969_v27  ;;  %663 = vst [vmem:[#allocation5] sm:$0x1] (!%p1495_p3), %v1970_v28 }
  0x54   : > { %v528_v17 = vld [vmem:[%s2150_s18] sm:$0xff] (!%p1495_p3)  ;;  %v530_v18 = vld [vmem:[%s2150_s18 + $0x10] sm:$0xff] (!%p1495_p3)  ;;  %1684 = vmatprep.subr.bf16.mxu0 (!%p1495_p3), %v1683_v15  ;;  %1739 = vmatprep.subr.bf16.mxu1 (!%p1495_p3), %v1683_v15  ;;  %v539_v23 = vld [vmem:[%s2155_s12 + $0x18] sm:$0xff] (!%p1495_p3)  ;;  %664 = vst [vmem:[#allocation3] sm:$0xff] (!%p1495_p3), %v1970_v28 }
  0x55   : > { %1593 = vmatprep.mubr.msk.f32.mxu0 (!%p1495_p3), %vm560_vm0, %v528_v17  ;;  %1596 = vmatprep.mubr.msk.f32.mxu1 (!%p1495_p3), %vm560_vm0, %v530_v18  ;;  %v538_v21 = vld [vmem:[%s2155_s12 + $0x10] sm:$0xff] (!%p1495_p3)  ;;  %v536_v22 = vld [vmem:[%s2155_s12] sm:$0xff] (!%p1495_p3)  ;;  %v537_v24 = vld [vmem:[%s2155_s12 + $0x8] sm:$0xff] (!%p1495_p3)  ;;  %665 = vst [vmem:[#allocation3 + $0x8] sm:$0xff] (!%p1495_p3), %v1970_v28 }
  0x56   : > { %1686 = vmatpush3.bf16.msra.mxu0 (!%p1495_p3), %v1683_v15  ;;  %1741 = vmatpush3.bf16.msra.mxu1 (!%p1495_p3), %v1683_v15  ;;  %v529_v25 = vld [vmem:[%s2150_s18 + $0x8] sm:$0xff] (!%p1495_p3)  ;;  %v531_v26 = vld [vmem:[%s2150_s18 + $0x18] sm:$0xff] (!%p1495_p3)  ;;  %666 = vst [vmem:[#allocation3 + $0x10] sm:$0xff] (!%p1495_p3), %v1970_v28  ;;  %667 = vst [vmem:[#allocation3 + $0x18] sm:$0xff] (!%p1495_p3), %v1970_v28 }
  0x57   : > { %1688 = vmatprep.subr.bf16.mxu0 (!%p1495_p3), %v1687_v20  ;;  %1740 = vmatprep.subr.bf16.mxu1 (!%p1495_p3), %v1687_v20 }
  0x58   : > { %552 = vperm.xlu1 %1841, %v538_v21   ;;  %542 = vperm.xlu0 %1840, %v536_v22  }
  0x5a   : > { %1690 = vmatpush3.bf16.msra.mxu0 %v1687_v20  ;;  %1742 = vmatpush3.bf16.msra.mxu1 %v1687_v20 }
  0x5c   : > { %557 = vperm.xlu1 %1841, %v539_v23   ;;  %547 = vperm.xlu0 %1840, %v537_v24  }
  0x5d   : > { %1594 = vmatmul.mubr.msk.f32.vlgmr.msra.gmra.mrb[0].mxu0 %vm560_vm0, %v529_v25  ;;  %1597 = vmatmul.mubr.msk.f32.vlgmr.msra.gmra.mrb[0].mxu1 %vm560_vm0, %v531_v26 }
  0xd7   : > { %v553_v29 = vpop.permute.xlu1 %552  ;;  %v543_v30 = vpop.permute.xlu0 %542 }
  0xdb   : > { %v558_v31 = vpop.permute.xlu1 %557  ;;  %v548_v32 = vpop.permute.xlu0 %547 }
 0x130   : > { %v1595_v33 = vpop.f32.mrb[0].mxu0  ;;  %v1598_v34 = vpop.f32.mrb[0].mxu1 }
 0x131   : > { %v645_v35 = vadd.f32 %v1595_v33, %v548_v32  ;;  %v655_v36 = vadd.f32 %v1598_v34, %v558_v31  ;;  %v639_v37 = vpop.f32.mrb[1].mxu0  ;;  %v649_v38 = vpop.f32.mrb[1].mxu1 }
 0x132   : > { %v640_v39 = vadd.f32 %v639_v37, %v543_v30  ;;  %v650_v40 = vadd.f32 %v649_v38, %v553_v29 }
 0x133   : > { %659 = vst [vmem:[#allocation2 + $0x8] sm:$0xff] %v645_v35  ;;  %661 = vst [vmem:[#allocation2 + $0x18] sm:$0xff] %v655_v36 }
 0x134   : > { %658 = vst [vmem:[#allocation2] sm:$0xff] %v640_v39  ;;  %660 = vst [vmem:[#allocation2 + $0x10] sm:$0xff] %v650_v40 }
 0x135 PF: > { %v668_v41 = vld [vmem:[%s2159_s1] sm:$0xff]  ;;  %v669_v44 = vld [vmem:[%s2159_s1 + $0x8] sm:$0xff]  ;;  %v670_v49 = vld [vmem:[%s2159_s1 + $0x10] sm:$0xff]  ;;  %vm708_vm1 = vcmask 261120   ;;  %v929_v37 = vlaneseq  ;;  %p1516_p4 = scmp.ne.s32.totalorder %s1942_s28, 1 }
 0x136   : > { %676 = vxpose.xlu0.b32.start [1/4] (short) %v668_v41, 128  ;;  %v671_v50 = vld [vmem:[%s2159_s1 + $0x18] sm:$0xff]  ;;  %v1021_v7 = vld [vmem:[%s2161_s24] sm:$0xff] }
 0x137   : > { %1663 = vmatprep.mubr.f32.mxu1 %v1021_v7  ;;  %v930_v40 = vshrl.u32 %v929_v37, 7 }
 0x13a   : > { %v673_v43 = vld [vmem:[#allocation2 + $0x8] sm:$0xff]  ;;  %v675_v47 = vld [vmem:[#allocation2 + $0x18] sm:$0xff]  ;;  %677 = vxpose.xlu0.b32.cont [2/4] (short) %v669_v44, 128  ;;  %v931_v44 = vsub.s32 0, %v930_v40 }
 0x13b   : > { %v672_v42 = vld [vmem:[#allocation2] sm:$0xff]  ;;  %v674_v46 = vld [vmem:[#allocation2 + $0x10] sm:$0xff] }
 0x13c   : > { %v1691_v45 = vpack.c.bf16 %v673_v43, %v672_v42  ;;  %v1695_v48 = vpack.c.bf16 %v675_v47, %v674_v46  ;;  %v902_v42 = vld [vmem:[#allocation4] sm:$0x1] }
 0x13e   : > { %1692 = vmatprep.subr.bf16.mxu0 %v1691_v45  ;;  %678 = vxpose.xlu0.b32.cont [3/4] (short) %v670_v49, 128 }
 0x13f   : > { %1694 = vmatpush3.bf16.msra.mxu0 %v1691_v45 }
 0x140   : > { %1696 = vmatprep.subr.bf16.mxu0 %v1695_v48 }
 0x142   : > { %679 = vxpose.xlu0.b32.end [4/4] (short) %v671_v50, 128 }
 0x143   : > { %1698 = vmatpush3.bf16.msra.mxu0 %v1695_v48 }
 0x1b6   : > { %v692_v51 = vpop.trf.xlu0 }
 0x1b7   : > { %1607 = vmatprep.mubr.msk.f32.mxu0 %vm708_vm1, %v692_v51 }
 0x1ba   : > { %v693_v52 = vpop.trf.xlu0 }
 0x1bb   : > { %1608 = vmatmul.mubr.msk.f32.vlgmr.msra.gmra.mrb[0].mxu0 %vm708_vm1, %v693_v52 }
 0x1be   : > { %v694_v53 = vpop.trf.xlu0 }
 0x1bf   : > { %1610 = vmatprep.mubr.msk.f32.mxu0 %vm708_vm1, %v694_v53 }
 0x1c2   : > { %v695_v54 = vpop.trf.xlu0 }
 0x1c3   : > { %1611 = vmatmul.mubr.msk.f32.gmra.mrb[2].mxu0 %vm708_vm1, %v695_v54 }
 0x1c6   : > { %v696_v55 = vpop.trf.xlu0 }
 0x1c7   : > { %1613 = vmatprep.mubr.msk.f32.mxu0 %vm708_vm1, %v696_v55 }
 0x1ca   : > { %v697_v56 = vpop.trf.xlu0 }
 0x1cb   : > { %1614 = vmatmul.mubr.msk.f32.gmra.mrb[4].mxu0 %vm708_vm1, %v697_v56 }
 0x1ce   : > { %v698_v57 = vpop.trf.xlu0 }
 0x1cf   : > { %1616 = vmatprep.mubr.msk.f32.mxu0 %vm708_vm1, %v698_v57 }
 0x1d2   : > { %v699_v58 = vpop.trf.xlu0 }
 0x1d3   : > { %1617 = vmatmul.mubr.msk.f32.gmra.mrb[6].mxu0 %vm708_vm1, %v699_v58 }
 0x1d6   : > { %v700_v59 = vpop.trf.xlu0 }
 0x1d7   : > { %1619 = vmatprep.mubr.msk.f32.mxu0 %vm708_vm1, %v700_v59 }
 0x1da   : > { %v701_v60 = vpop.trf.xlu0 }
 0x1db   : > { %1620 = vmatmul.mubr.msk.f32.gmra.mrb[8].mxu0 %vm708_vm1, %v701_v60 }
 0x1de   : > { %v702_v61 = vpop.trf.xlu0 }
 0x1df   : > { %1622 = vmatprep.mubr.msk.f32.mxu0 %vm708_vm1, %v702_v61 }
 0x1e2   : > { %v703_v62 = vpop.trf.xlu0 }
 0x1e3   : > { %1623 = vmatmul.mubr.msk.f32.gmra.mrb[10].mxu0 %vm708_vm1, %v703_v62 }
 0x1e6   : > { %v704_v63 = vpop.trf.xlu0 }
 0x1e7   : > { %1625 = vmatprep.mubr.msk.f32.mxu0 %vm708_vm1, %v704_v63 }
 0x1ea   : > { %v705_v0 = vpop.trf.xlu0 }
 0x1eb   : > { %1626 = vmatmul.mubr.msk.f32.gmra.mrb[12].mxu0 %vm708_vm1, %v705_v0 }
 0x1ee   : > { %v706_v1 = vpop.trf.xlu0 }
 0x1ef   : > { %1628 = vmatprep.mubr.msk.f32.mxu0 %vm708_vm1, %v706_v1 }
 0x1f2   : > { %v707_v2 = vpop.trf.xlu0 }
 0x1f3   : > { %1629 = vmatmul.mubr.msk.f32.gmra.mrb[14].mxu0 %vm708_vm1, %v707_v2 }
 0x28e   : > { %v2202_v3 = vpop.f32.mrb[0].mxu0 }
 0x28f   : > { %v2204_v4 = vpop.f32.mrb[1].mxu0 }
 0x296   : > { %v2206_v5 = vpop.f32.mrb[2].mxu0 }
 0x297   : > { %v2208_v6 = vpop.f32.mrb[3].mxu0 }
 0x29e   : > { %v2211_v8 = vpop.f32.mrb[4].mxu0 }
 0x29f   : > { %v904_v9 = vmax.f32 %v2202_v3, %v2211_v8  ;;  %v843_v10 = vpop.f32.mrb[5].mxu0 }
 0x2a0   : > { %v903_v11 = vmax.f32 %v2204_v4, %v843_v10 }
 0x2a6   : > { %v2216_v12 = vpop.f32.mrb[6].mxu0 }
 0x2a7   : > { %v906_v13 = vmax.f32 %v2206_v5, %v2216_v12  ;;  %v853_v14 = vpop.f32.mrb[7].mxu0 }
 0x2a8   : > { %v905_v15 = vmax.f32 %v2208_v6, %v853_v14 }
 0x2ae   : > { %v2221_v16 = vpop.f32.mrb[8].mxu0 }
 0x2af   : > { %v908_v17 = vmax.f32 %v904_v9, %v2221_v16  ;;  %v863_v18 = vpop.f32.mrb[9].mxu0 }
 0x2b0   : > { %v907_v19 = vmax.f32 %v903_v11, %v863_v18 }
 0x2b6   : > { %v2224_v20 = vpop.f32.mrb[10].mxu0 }
 0x2b7   : > { %v910_v21 = vmax.f32 %v906_v13, %v2224_v20  ;;  %v2227_v22 = vpop.f32.mrb[11].mxu0 }
 0x2b8   : > { %v909_v23 = vmax.f32 %v905_v15, %v2227_v22 }
 0x2be   : > { %v2230_v24 = vpop.f32.mrb[12].mxu0 }
 0x2bf   : > { %v912_v25 = vmax.f32 %v908_v17, %v2230_v24  ;;  %v2233_v26 = vpop.f32.mrb[13].mxu0 }
 0x2c0   : > { %v911_v27 = vmax.f32 %v907_v19, %v2233_v26 }
 0x2c2   : > { %v915_v28 = vmax.f32 %v911_v27, %v912_v25 }
 0x2c6   : > { %v2236_v29 = vpop.f32.mrb[14].mxu0 }
 0x2c7   : > { %v914_v30 = vmax.f32 %v910_v21, %v2236_v29  ;;  %v2239_v31 = vpop.f32.mrb[15].mxu0 }
 0x2c8   : > { %v913_v32 = vmax.f32 %v909_v23, %v2239_v31 }
 0x2ca   : > { %v916_v33 = vmax.f32 %v913_v32, %v914_v30 }
 0x2cc   : > { %v917_v34 = vmax.f32 %v915_v28, %v916_v33 }
 0x2ce   : > { %v918_v35 = vrot.slane %v917_v34, 4 }
 0x2d0   : > { %v919_v36 = vmax.f32 %v917_v34, %v918_v35 }
 0x2d2   : > { %v920_v38 = vrot.slane %v919_v36, 2 }
 0x2d4   : > { %v921_v39 = vmax.f32 %v919_v36, %v920_v38 }
 0x2d6   : > { %v922_v41 = vrot.slane %v921_v39, 1 }
 0x2d8   : > { %v923_v43 = vmax.f32 %v921_v39, %v922_v41 }
 0x2da   : > { %v924_v45 = vmax.f32 %v902_v42, %v923_v43 }
 0x2dc   : > { %v925_v46 = vsub.f32 %v902_v42, %v924_v45  ;;  %v932_v47 = vrot.slane %v924_v45, %v931_v44  ;;  %1118 = vst [vmem:[#allocation4] sm:$0x1] %v924_v45 }
 0x2de   : > { %v926_v48 = vmul.f32 1.442695, %v925_v46  ;;  %v934_v49 = vsub.f32 %v2204_v4, %v932_v47  ;;  %v935_v50 = vsub.f32 %v2202_v3, %v932_v47  ;;  %v936_v51 = vsub.f32 %v2208_v6, %v932_v47 }
 0x2df   : > { %v937_v52 = vsub.f32 %v2206_v5, %v932_v47  ;;  %v938_v53 = vsub.f32 %v843_v10, %v932_v47  ;;  %v939_v54 = vsub.f32 %v2211_v8, %v932_v47  ;;  %v940_v55 = vsub.f32 %v853_v14, %v932_v47 }
 0x2e0   : > { %1842 = vpow2.f32 %v926_v48  ;;  %v941_v56 = vsub.f32 %v2216_v12, %v932_v47  ;;  %v942_v57 = vsub.f32 %v863_v18, %v932_v47  ;;  %v943_v58 = vsub.f32 %v2221_v16, %v932_v47 }
 0x2e1   : > { %v944_v59 = vsub.f32 %v2227_v22, %v932_v47  ;;  %v945_v60 = vsub.f32 %v2224_v20, %v932_v47  ;;  %v946_v61 = vsub.f32 %v2233_v26, %v932_v47  ;;  %v947_v62 = vsub.f32 %v2230_v24, %v932_v47 }
 0x2e2   : > { %v948_v63 = vsub.f32 %v2239_v31, %v932_v47  ;;  %v949_v0 = vsub.f32 %v2236_v29, %v932_v47  ;;  %v950_v1 = vmul.f32 1.442695, %v934_v49  ;;  %v952_v2 = vmul.f32 1.442695, %v935_v50 }
 0x2e3   : > { %v954_v3 = vmul.f32 1.442695, %v936_v51  ;;  %v956_v4 = vmul.f32 1.442695, %v937_v52  ;;  %v958_v5 = vmul.f32 1.442695, %v938_v53 }
 0x2e4   : > { %1844 = vpow2.f32 %v950_v1  ;;  %v960_v6 = vmul.f32 1.442695, %v939_v54  ;;  %v962_v7 = vmul.f32 1.442695, %v940_v55  ;;  %v964_v8 = vmul.f32 1.442695, %v941_v56 }
 0x2e5   : > { %1846 = vpow2.f32 %v952_v2  ;;  %v966_v9 = vmul.f32 1.442695, %v942_v57  ;;  %v968_v10 = vmul.f32 1.442695, %v943_v58  ;;  %v970_v12 = vmul.f32 1.442695, %v944_v59 }
 0x2e6   : > { %1848 = vpow2.f32 %v954_v3  ;;  %v972_v13 = vmul.f32 1.442695, %v945_v60  ;;  %v974_v15 = vmul.f32 1.442695, %v946_v61  ;;  %v976_v16 = vmul.f32 1.442695, %v947_v62 }
 0x2e7   : > { %1850 = vpow2.f32 %v956_v4  ;;  %v978_v18 = vmul.f32 1.442695, %v948_v63  ;;  %v980_v20 = vmul.f32 1.442695, %v949_v0  ;;  %v1022_v59 = vld [vmem:[%s2161_s24 + $0x8] sm:$0xff]  ;;  %v1023_v61 = vld [vmem:[%s2161_s24 + $0x10] sm:$0xff] }
 0x2e8   : > { %1852 = vpow2.f32 %v958_v5  ;;  %v1024_v63 = vld [vmem:[%s2161_s24 + $0x18] sm:$0xff] }
 0x2e9   : > { %1854 = vpow2.f32 %v960_v6  ;;  %v982_v1 = vld [vmem:[#allocation5] sm:$0x1]  ;;  %v1008_v6 = vld [vmem:[#allocation3 + $0x8] sm:$0xff] }
 0x2ea   : > { %v2255_v11 = vpop.eup %1842  ;;  %1856 = vpow2.f32 %v962_v7  ;;  %v1007_v7 = vld [vmem:[#allocation3] sm:$0xff] }
 0x2eb   : > { %1858 = vpow2.f32 %v964_v8  ;;  %v2258_v14 = vrot.slane %v2255_v11, %v931_v44  ;;  %v983_v3 = vmul.f32 %v2255_v11, %v982_v1 }
 0x2ec   : > { %1860 = vpow2.f32 %v966_v9 }
 0x2ed   : > { %1862 = vpow2.f32 %v968_v10  ;;  %v1018_v8 = vmul.f32 %v2258_v14, %v1008_v6  ;;  %v1017_v10 = vmul.f32 %v2258_v14, %v1007_v7 }
 0x2ee   : > { %v1845_v17 = vpop.eup %1844  ;;  %1864 = vpow2.f32 %v970_v12  ;;  %v1010_v12 = vld [vmem:[#allocation3 + $0x18] sm:$0xff] }
 0x2ef   : > { %v1847_v19 = vpop.eup %1846  ;;  %1866 = vpow2.f32 %v972_v13 }
 0x2f0   : > { %v1849_v21 = vpop.eup %1848  ;;  %1868 = vpow2.f32 %v974_v15  ;;  %v984_v22 = vadd.f32 %v1847_v19, %v1845_v17  ;;  %v1699_v23 = vpack.c.bf16 %v1847_v19, %v1845_v17 }
 0x2f1   : > { %v1851_v24 = vpop.eup %1850  ;;  %1870 = vpow2.f32 %v976_v16  ;;  %v1009_v16 = vld [vmem:[#allocation3 + $0x10] sm:$0xff] }
 0x2f2   : > { %v1853_v25 = vpop.eup %1852  ;;  %1872 = vpow2.f32 %v978_v18  ;;  %v985_v26 = vadd.f32 %v1849_v21, %v984_v22  ;;  %1700 = vmatprep.subr.bf16.mxu1 %v1699_v23  ;;  %v1703_v27 = vpack.c.bf16 %v1851_v24, %v1849_v21  ;;  %v1020_v18 = vmul.f32 %v2258_v14, %v1010_v12 }
 0x2f3   : > { %v1855_v28 = vpop.eup %1854  ;;  %1874 = vpow2.f32 %v980_v20  ;;  %1702 = vmatpush3.bf16.msra.mxu1 %v1699_v23  ;;  %v1019_v19 = vmul.f32 %v2258_v14, %v1009_v16  ;;  %v1141_v14 = vld [vmem:[%s2354_s5 + $0x10] sm:$0xff] (!%p1516_p4) }
 0x2f4   : > { %v1857_v29 = vpop.eup %1856  ;;  %v986_v30 = vadd.f32 %v1851_v24, %v985_v26  ;;  %1704 = vmatprep.subr.bf16.mxu1 %v1703_v27  ;;  %v1707_v31 = vpack.c.bf16 %v1855_v28, %v1853_v25  ;;  %v1139_v24 = vld [vmem:[%s2354_s5] sm:$0xff] (!%p1516_p4)  ;;  %v1145_v26 = vld [vmem:[%s2355_s6 + $0x10] sm:$0xff] (!%p1516_p4) }
 0x2f5   : > { %v1859_v32 = vpop.eup %1858  ;;  %1677 = vmatprep.mubr.msk.f32.mxu0 (!%p1516_p4), %vm708_vm1, %v1139_v24 }
 0x2f6   : > { %v1861_v33 = vpop.eup %1860  ;;  %v987_v34 = vadd.f32 %v1853_v25, %v986_v30  ;;  %v1711_v35 = vpack.c.bf16 %v1859_v32, %v1857_v29  ;;  %v1971_v25 = vmov (!%p1516_p4), 0  }
 0x2f7   : > { %v1863_v36 = vpop.eup %1862  ;;  %1706 = vmatpush3.bf16.msra.mxu1 %v1703_v27  ;;  %1877 = vset.pattern.permute.xlu1 (!%p1516_p4), %v1971_v25  ;;  %v1143_v27 = vld [vmem:[%s2355_s6] sm:$0xff] (!%p1516_p4) }
 0x2f8   : > { %v1865_v37 = vpop.eup %1864  ;;  %v988_v38 = vadd.f32 %v1855_v28, %v987_v34  ;;  %1708 = vmatprep.subr.bf16.mxu1 %v1707_v31  ;;  %v1715_v39 = vpack.c.bf16 %v1863_v36, %v1861_v33  ;;  %1876 = vset.pattern.permute.xlu0 (!%p1516_p4), %v1971_v25  ;;  %v1146_v28 = vld [vmem:[%s2355_s6 + $0x18] sm:$0xff] (!%p1516_p4) }
 0x2f9   : > { %v1867_v40 = vpop.eup %1866  ;;  %1159 = vperm.xlu1 (!%p1516_p4), %1877, %v1145_v26   ;;  %1149 = vperm.xlu0 (!%p1516_p4), %1876, %v1143_v27  }
 0x2fa   : > { %v1869_v41 = vpop.eup %1868  ;;  %v989_v42 = vadd.f32 %v1857_v29, %v988_v38  ;;  %v1719_v43 = vpack.c.bf16 %v1867_v40, %v1865_v37  ;;  %v1144_v29 = vld [vmem:[%s2355_s6 + $0x8] sm:$0xff] (!%p1516_p4) }
 0x2fb   : > { %v1871_v44 = vpop.eup %1870  ;;  %1710 = vmatpush3.bf16.msra.mxu1 %v1707_v31 }
 0x2fc   : > { %v1873_v45 = vpop.eup %1872  ;;  %v990_v46 = vadd.f32 %v1859_v32, %v989_v42  ;;  %1712 = vmatprep.subr.bf16.mxu1 %v1711_v35  ;;  %v1723_v47 = vpack.c.bf16 %v1871_v44, %v1869_v41  ;;  %v1142_v42 = vld [vmem:[%s2354_s5 + $0x18] sm:$0xff] (!%p1516_p4) }
 0x2fd   : > { %v1875_v48 = vpop.eup %1874  ;;  %1164 = vperm.xlu1 (!%p1516_p4), %1877, %v1146_v28   ;;  %1154 = vperm.xlu0 (!%p1516_p4), %1876, %v1144_v29  }
 0x2fe   : > { %v991_v49 = vadd.f32 %v1861_v33, %v990_v46  ;;  %v1727_v50 = vpack.c.bf16 %v1875_v48, %v1873_v45 }
 0x2ff   : > { %1714 = vmatpush3.bf16.msra.mxu1 %v1711_v35 }
 0x300   : > { %v992_v51 = vadd.f32 %v1863_v36, %v991_v49  ;;  %1716 = vmatprep.subr.bf16.mxu1 %v1715_v39 }
 0x302   : > { %v993_v52 = vadd.f32 %v1865_v37, %v992_v51 }
 0x303   : > { %1718 = vmatpush3.bf16.msra.mxu1 %v1715_v39 }
 0x304   : > { %v994_v53 = vadd.f32 %v1867_v40, %v993_v52  ;;  %1720 = vmatprep.subr.bf16.mxu1 %v1719_v43 }
 0x306   : > { %v995_v54 = vadd.f32 %v1869_v41, %v994_v53  ;;  %v1140_v41 = vld [vmem:[%s2354_s5 + $0x8] sm:$0xff] (!%p1516_p4) }
 0x307   : > { %1722 = vmatpush3.bf16.msra.mxu1 %v1719_v43 }
 0x308   : > { %v996_v55 = vadd.f32 %v1871_v44, %v995_v54  ;;  %1724 = vmatprep.subr.bf16.mxu1 %v1723_v47  ;;  %v1264_v54 = vld [vmem:[%s2157_s0] sm:$0xff] (!%p1516_p4) }
 0x30a   : > { %v997_v56 = vadd.f32 %v1873_v45, %v996_v55 }
 0x30b   : > { %1726 = vmatpush3.bf16.msra.mxu1 %v1723_v47 }
 0x30c   : > { %v998_v57 = vadd.f32 %v1875_v48, %v997_v56  ;;  %1728 = vmatprep.subr.bf16.mxu1 %v1727_v50  ;;  %v1265_v48 = vld [vmem:[%s2157_s0 + $0x8] sm:$0xff] (!%p1516_p4)  ;;  %v1266_v56 = vld [vmem:[%s2157_s0 + $0x10] sm:$0xff] (!%p1516_p4) }
 0x30e   : > { %v999_v58 = vrot.slane %v998_v57, 4 }
 0x30f   : > { %1730 = vmatpush3.bf16.msra.mxu1 %v1727_v50  ;;  %v1267_v50 = vld [vmem:[%s2157_s0 + $0x18] sm:$0xff] (!%p1516_p4) }
 0x310   : > { %v1000_v60 = vadd.f32 %v999_v58, %v998_v57 }
 0x312   : > { %v1001_v62 = vrot.slane %v1000_v60, 2  ;;  %1664 = vmatmul.mubr.f32.vlgmr.msra.gmra.mrb[0].mxu1 %v1022_v59 }
 0x313   : > { %1666 = vmatprep.mubr.f32.mxu1 %v1023_v61 }
 0x314   : > { %v1002_v0 = vadd.f32 %v1001_v62, %v1000_v60 }
 0x316   : > { %v1003_v2 = vrot.slane %v1002_v0, 1  ;;  %1667 = vmatmul.mubr.f32.gmra.mrb[2].mxu1 %v1024_v63 }
 0x317   : > { %1680 = vmatprep.mubr.msk.f32.mxu1 (!%p1516_p4), %vm708_vm1, %v1141_v14 }
 0x318   : > { %v1004_v4 = vadd.f32 %v1003_v2, %v1002_v0 }
 0x31a   : > { %v1005_v5 = vadd.f32 %v1004_v4, %v983_v3 }
 0x31c   : > { %1006 = vst [vmem:[#allocation5] sm:$0x1] %v1005_v5 }
 0x323   : > { %v1517_v23 = vld [vmem:[#allocation5] ss:$0 sm:$0xff] (!%p1516_p4) }
 0x324   : > { %1878 = vrcp.f32 (!%p1516_p4), %v1517_v23 }
 0x32e   : > { %v1879_v34 = vpop.eup (!%p1516_p4), %1878 }
 0x378   : > { %v1160_v43 = vpop.permute.xlu1 (!%p1516_p4), %1159  ;;  %v1150_v44 = vpop.permute.xlu0 (!%p1516_p4), %1149 }
 0x37c   : > { %v1165_v45 = vpop.permute.xlu1 (!%p1516_p4), %1164  ;;  %v1155_v46 = vpop.permute.xlu0 (!%p1516_p4), %1154 }
 0x3e5   : > { %v1665_v9 = vpop.f32.mrb[0].mxu1 }
 0x3e6   : > { %v1111_v13 = vadd.f32 %v1665_v9, %v1018_v8  ;;  %v1091_v15 = vpop.f32.mrb[1].mxu1 }
 0x3e7   : > { %v1110_v17 = vadd.f32 %v1091_v15, %v1017_v10  ;;  %1122 = sbr.rel (%p1516_p4) target bundleno = 1239 (0x4d7), region = 170 }
 0x3e8   : > { %1115 = vst [vmem:[#allocation3 + $0x8] sm:$0xff] %v1111_v13 }
 0x3e9   : > { %1114 = vst [vmem:[#allocation3] sm:$0xff] %v1110_v17  ;;  %v1668_v11 = vpop.f32.mrb[2].mxu1 }
 0x3ea   : > { %v1113_v20 = vadd.f32 %v1668_v11, %v1020_v18  ;;  %v1101_v21 = vpop.f32.mrb[3].mxu1 }
 0x3eb   : > { %v1112_v22 = vadd.f32 %v1101_v21, %v1019_v19 }
 0x3ec   : > { %1117 = vst [vmem:[#allocation3 + $0x18] sm:$0xff] %v1113_v20 }
 0x3ed   : > { %1116 = vst [vmem:[#allocation3 + $0x10] sm:$0xff] %v1112_v22 }
 0x3ef   : > { %v1124_v31 = vld [vmem:[#allocation3 + $0x8] sm:$0xff] }
 0x3f0   : > { %v1123_v30 = vld [vmem:[#allocation3] sm:$0xff]  ;;  %v1136_v36 = vmul.f32 %v1879_v34, %v1124_v31 }
 0x3f1   : > { %v1135_v35 = vmul.f32 %v1879_v34, %v1123_v30 }
 0x3f3   : > { %v1126_v33 = vld [vmem:[#allocation3 + $0x18] sm:$0xff]  ;;  %v1731_v39 = vpack.c.bf16 %v1136_v36, %v1135_v35 }
 0x3f4   : > { %v1125_v32 = vld [vmem:[#allocation3 + $0x10] sm:$0xff]  ;;  %v1138_v38 = vmul.f32 %v1879_v34, %v1126_v33 }
 0x3f5   : > { %v1137_v37 = vmul.f32 %v1879_v34, %v1125_v32  ;;  %1732 = vmatprep.subr.bf16.mxu0 %v1731_v39  ;;  %1743 = vmatprep.subr.bf16.mxu1 %v1731_v39 }
 0x3f6   : > { %1734 = vmatpush3.bf16.msra.mxu0 %v1731_v39  ;;  %1745 = vmatpush3.bf16.msra.mxu1 %v1731_v39 }
 0x3f7   : > { %v1735_v40 = vpack.c.bf16 %v1138_v38, %v1137_v37 }
 0x3f9   : > { %1736 = vmatprep.subr.bf16.mxu0 %v1735_v40  ;;  %1744 = vmatprep.subr.bf16.mxu1 %v1735_v40 }
 0x3fa   : > { %1738 = vmatpush3.bf16.msra.mxu0 %v1735_v40  ;;  %1746 = vmatpush3.bf16.msra.mxu1 %v1735_v40 }
 0x3fd   : > { %1678 = vmatmul.mubr.msk.f32.vlgmr.msra.gmra.mrb[0].mxu0 %vm708_vm1, %v1140_v41  ;;  %1681 = vmatmul.mubr.msk.f32.vlgmr.msra.gmra.mrb[0].mxu1 %vm708_vm1, %v1142_v42 }
 0x4d0   : > { %v1679_v47 = vpop.f32.mrb[0].mxu0  ;;  %v1682_v49 = vpop.f32.mrb[0].mxu1 }
 0x4d1   : > { %v1251_v51 = vadd.f32 %v1679_v47, %v1155_v46  ;;  %v1261_v52 = vadd.f32 %v1682_v49, %v1165_v45  ;;  %v1245_v53 = vpop.f32.mrb[1].mxu0  ;;  %v1255_v55 = vpop.f32.mrb[1].mxu1 }
 0x4d2   : > { %v1246_v57 = vadd.f32 %v1245_v53, %v1150_v44  ;;  %v1256_v58 = vadd.f32 %v1255_v55, %v1160_v43 }
 0x4d3   : > { %v1269_v59 = vadd.f32 %v1265_v48, %v1251_v51  ;;  %v1271_v60 = vadd.f32 %v1267_v50, %v1261_v52 }
 0x4d4   : > { %v1268_v61 = vadd.f32 %v1264_v54, %v1246_v57  ;;  %v1270_v62 = vadd.f32 %v1266_v56, %v1256_v58 }
 0x4d5   : > { %1273 = vst [vmem:[%s2163_s26 + $0x8] sm:$0xff] %v1269_v59  ;;  %1275 = vst [vmem:[%s2163_s26 + $0x18] sm:$0xff] %v1271_v60 }
 0x4d6   : > { %1272 = vst [vmem:[%s2163_s26] sm:$0xff] %v1268_v61  ;;  %1274 = vst [vmem:[%s2163_s26 + $0x10] sm:$0xff] %v1270_v62 }
 0x4d7 PF: > { %1282 = sbr.rel (!%p2103_p9) target bundleno = 1250 (0x4e2), region = 174  ;;  %s2375_s21 = sld [smem:[#allocation10_spill]] (%p2103_p9) }
 0x4d8   : > { %s1523_s0 = sshll.u32 (%p2103_p9), %s1950_s30, 3  ;;  %s2376_s29 = sld [smem:[#allocation17_spill]] (%p2103_p9) }
 0x4dc   : > { %v1322_v0 = vld [vmem:[%s2163_s26 + $0x8] sm:$0xff] (%p2103_p9)  ;;  %v1326_v2 = vld [vmem:[%s2163_s26 + $0x18] sm:$0xff] (%p2103_p9) }
 0x4dd   : > { %v1320_v63 = vld [vmem:[%s2163_s26] sm:$0xff] (%p2103_p9)  ;;  %s1284_s7 = sadd.s32 (%p2103_p9), %s2375_s21, %s1523_s0  ;;  %v1324_v1 = vld [vmem:[%s2163_s26 + $0x10] sm:$0xff] (%p2103_p9) }
 0x4de   : > { %s1524_s20 = sshll.u32 %s1284_s7, 3 }
 0x4df   : > { %s1286_s14 = scalar_lea.vmem %s2376_s29, %s1524_s20 }
 0x4e0   : > { %1321 = vst [vmem:[%s1286_s14] sm:$0xff] %v1320_v63  ;;  %1323 = vst [vmem:[%s1286_s14 + $0x10] sm:$0xff] %v1322_v0 }
 0x4e1   : > { %1325 = vst [vmem:[%s1286_s14 + $0x20] sm:$0xff] %v1324_v1  ;;  %1327 = vst [vmem:[%s1286_s14 + $0x30] sm:$0xff] %v1326_v2 }
 0x4e2 PF: > { %s17_s11 = sadd.s32 1, %s1966_s11   ;;  %s2377_s23 = sld [smem:[#allocation11_spill]] }
 0x4e3   : > { %p14_p5 = scmp.ge.s32.totalorder %s17_s11, 10   ;;  %s2378_s18 = sld [smem:[#allocation12_spill]] }
 0x4e4   : > { %s2379_s17 = sld [smem:[#allocation13_spill]]  ;;  %s2380_s24 = smov %s1930_s25 }
 0x4e5   : > { %s2381_s25 = smov %s2114_s13  ;;  %s2382_s26 = smov %s1938_s27 }
 0x4e6   : > { %s2383_s27 = smov %s2111_s15  ;;  %s2384_s28 = smov %s1954_s8 }
 0x4e7   : > { %s2385_s29 = smov %s1958_s9  ;;  %s2386_s30 = smov %s1962_s10 }
 0x4e8   : > { %s2387_s8 = smov %s2377_s23  ;;  %16 = sbr.rel (!%p14_p5) target bundleno = 10 (0xa), region = 265 }
 0x4e9   : > { %s2388_s9 = smov %s2378_s18 }
 0x4ea   : > { %s2389_s10 = smov %s2379_s17 }

</bundles_post_ra>
